<compile_context>
chip_gen: v7x
topology: tpu7x:2x2x1
jax: 0.10.0
libtpu: 0.0.40
codegen_flags: <defaults>
</compile_context>

<pallas_src>
import functools

import jax
import jax.numpy as jnp
from jax import lax
from jax.experimental import pallas as pl
from jax.experimental.pallas import tpu as pltpu

EPS = 1e-6


def _silu(x):
    return x * jax.nn.sigmoid(x)


def _layernorm(x, w, b):
    mean = jnp.mean(x, axis=-1, keepdims=True)
    var = jnp.mean(jnp.square(x - mean), axis=-1, keepdims=True)
    return (x - mean) * lax.rsqrt(var + EPS) * w + b


# ---------------------------------------------------------------------------
# Single fused kernel: norm1/modulate + fused-QKV attention + residual +
# norm2/modulate + MLP + residual.  Processes `bt` batch elements per step,
# with sequences flattened to (bt*L, C) rows for the big matmuls.
# ---------------------------------------------------------------------------
def _dit_kernel(bt, L, H, Dh, C,
                x_ref, ada_ref,
                ln1_w_ref, ln1_b_ref, ln2_w_ref, ln2_b_ref,
                wqkv_ref, bqkv_ref, w1_ref, b1_ref, w2_ref, b2_ref,
                out_ref, obuf):
    f32 = jnp.float32
    bf16 = jnp.bfloat16

    # Broadcast each batch row of the adaLN vector over its L sequence rows
    # (sublane broadcast), then slice the 6 lane-aligned chunks.
    ada_rows = jnp.concatenate(
        [jnp.broadcast_to(ada_ref[pl.ds(i, 1), :], (L, 6 * C)) for i in range(bt)],
        axis=0)                                                  # (bt*L, 6C)
    alpha1 = ada_rows[:, 0 * C:1 * C]
    alpha2 = ada_rows[:, 1 * C:2 * C]
    beta1 = ada_rows[:, 2 * C:3 * C]
    beta2 = ada_rows[:, 3 * C:4 * C]
    gamma1 = ada_rows[:, 4 * C:5 * C]
    gamma2 = ada_rows[:, 5 * C:6 * C]

    x = x_ref[...].astype(f32)                                   # (bt*L, C)

    # ---- norm1 + modulate --------------------------------------------------
    h = _layernorm(x, ln1_w_ref[...], ln1_b_ref[...])
    h = h * (1.0 + gamma1) + beta1

    # ---- fused, lane-dense QKV projection: (bt*L, C) @ (C, 3C) --------------
    qkv = jnp.dot(h.astype(bf16), wqkv_ref[...],
                  preferred_element_type=f32) + bqkv_ref[...]    # (bt*L, 3C)

    # ---- per-batch / per-head attention (all in VMEM) -----------------------
    scale = Dh ** -0.5
    attn_chunks = []
    for i in range(bt):                                          # static unroll
        base = i * L
        for hd in range(H):                                      # static unroll
            q = qkv[base:base + L, hd * Dh:(hd + 1) * Dh].astype(bf16)
            k = qkv[base:base + L, C + hd * Dh:C + (hd + 1) * Dh].astype(bf16)
            v = qkv[base:base + L, 2 * C + hd * Dh:2 * C + (hd + 1) * Dh].astype(bf16)
            # scores = q @ k^T (contract last dims; no explicit transpose)
            s = lax.dot_general(q, k, (((1,), (1,)), ((), ())),
                                preferred_element_type=f32) * scale
            m = jnp.max(s, axis=-1, keepdims=True)
            e = jnp.exp(s - m)
            p = e * pl.reciprocal(jnp.sum(e, axis=-1, keepdims=True), approx=True)
            o = jnp.dot(p.astype(bf16), v, preferred_element_type=f32)  # (L, Dh)
            obuf[hd * L:(hd + 1) * L, :] = o                     # rows = h*L + l

        # Reproduce torch's `attention_out.view(B, L, -1)` on [B, H, L, Dh]:
        #   attn[l', b*Dh:(b+1)*Dh] = obuf[l'*H + b]  -> strided sublane reads.
        attn_i = jnp.concatenate(
            [obuf[pl.ds(b, L, stride=H), :] for b in range(H)], axis=-1)  # (L, C)
        attn_chunks.append(attn_i)
    attn = jnp.concatenate(attn_chunks, axis=0)                  # (bt*L, C)

    # ---- alpha1 residual + norm2 + modulate + MLP + alpha2 residual ---------
    x1 = x + attn * alpha1
    h2 = _layernorm(x1, ln2_w_ref[...], ln2_b_ref[...])
    h2 = h2 * (1.0 + gamma2) + beta2
    m1 = jnp.dot(h2.astype(bf16), w1_ref[...],
                 preferred_element_type=f32) + b1_ref[...]
    m1 = _silu(m1)
    m2 = jnp.dot(m1.astype(bf16), w2_ref[...],
                 preferred_element_type=f32) + b2_ref[...]
    out_ref[...] = (m2 * alpha2 + x1).astype(out_ref.dtype)


# ---------------------------------------------------------------------------
# Wrapper: parameter plumbing + pallas_call plumbing.
# ---------------------------------------------------------------------------
def dit_block_forward(x, cond, params, num_heads, batch_tile=None):
    B, L, C = x.shape
    Dh = C // num_heads
    assert Dh * num_heads == C
    hid = params["w1"].shape[0]                                  # mlp hidden = 4C
    f32, bf16 = jnp.float32, jnp.bfloat16

    # adaLN hoisted out of the kernel: ONE batched matmul over all B rows.
    ada = (_silu(cond) @ params["w_ada"].T + params["b_ada"]).astype(f32)  # (B, 6C)

    # Batch tile: several batch elements per grid step (amortize per-step
    # overhead, raise matmul M).  Must divide B and keep blocks tile-legal
    # (second-minor block dims either full-extent or a multiple of 8).
    if batch_tile is None:
        batch_tile = 1
        for cand in range(1, B + 1):
            if B % cand != 0 or cand * L > 512:
                continue
            if (cand == B or cand % 8 == 0) and (cand == B or (cand * L) % 8 == 0):
                batch_tile = cand
    bt = batch_tile
    assert B % bt == 0

    # Fused QKV weight (C, 3C) in bf16, single lane-dense bias row (1, 3C).
    w_qkv = jnp.concatenate(
        [params["wq"].T, params["wk"].T, params["wv"].T], axis=1).astype(bf16)
    b_qkv = jnp.concatenate(
        [params["bq"], params["bk"], params["bv"]]).reshape(1, 3 * C).astype(f32)

    ln1_w = params["ln1_w"].reshape(1, C).astype(f32)
    ln1_b = params["ln1_b"].reshape(1, C).astype(f32)
    ln2_w = params["ln2_w"].reshape(1, C).astype(f32)
    ln2_b = params["ln2_b"].reshape(1, C).astype(f32)
    w1T = params["w1"].T.astype(bf16)                            # (C, hid)
    b1 = params["b1"].reshape(1, hid).astype(f32)
    w2T = params["w2"].T.astype(bf16)                            # (hid, C)
    b2 = params["b2"].reshape(1, C).astype(f32)

    # Flatten sequences to rows so the kernel sees lane-dense 2-D tiles.
    x2 = x.reshape(B * L, C)

    def _full(shape):
        return pl.BlockSpec(shape, lambda i, _n=len(shape): (0,) * _n)

    out2 = pl.pallas_call(
        functools.partial(_dit_kernel, bt, L, num_heads, Dh, C),
        out_shape=jax.ShapeDtypeStruct((B * L, C), f32),
        grid_spec=pltpu.PrefetchScalarGridSpec(
            num_scalar_prefetch=0,
            grid=(B // bt,),
            in_specs=[
                pl.BlockSpec((bt * L, C), lambda i: (i, 0)),     # hidden rows
                pl.BlockSpec((bt, 6 * C), lambda i: (i, 0)),     # adaLN rows
                _full((1, C)), _full((1, C)),                    # ln1 w, b
                _full((1, C)), _full((1, C)),                    # ln2 w, b
                _full((C, 3 * C)), _full((1, 3 * C)),            # fused QKV
                _full((C, hid)), _full((1, hid)),                # mlp fc1
                _full((hid, C)), _full((1, C)),                  # mlp fc2
            ],
            out_specs=pl.BlockSpec((bt * L, C), lambda i: (i, 0)),
            scratch_shapes=[pltpu.VMEM((num_heads * L, Dh), jnp.float32)],
        ),
        compiler_params=pltpu.CompilerParams(
            dimension_semantics=("parallel",),
            vmem_limit_bytes=32 * 1024 * 1024),
    )(x2, ada, ln1_w, ln1_b, ln2_w, ln2_b, w_qkv, b_qkv, w1T, b1, w2T, b2)

    return out2.reshape(B, L, C)


# ---------------------------------------------------------------------------
# Deterministic parameter init (torch Linear layout: weight (out, in)).
# ---------------------------------------------------------------------------
def make_params(key, C, mlp_ratio=4):
    hid = C * mlp_ratio
    ks = jax.random.split(key, 12)
    init = lambda k, shape: (0.02 * jax.random.normal(k, shape)).astype(jnp.float32)
    return {
        "ln1_w": jnp.ones((C,), jnp.float32), "ln1_b": jnp.zeros((C,), jnp.float32),
        "ln2_w": jnp.ones((C,), jnp.float32), "ln2_b": jnp.zeros((C,), jnp.float32),
        "wq": init(ks[0], (C, C)), "bq": init(ks[1], (C,)),
        "wk": init(ks[2], (C, C)), "bk": init(ks[3], (C,)),
        "wv": init(ks[4], (C, C)), "bv": init(ks[5], (C,)),
        "w1": init(ks[6], (hid, C)), "b1": init(ks[7], (hid,)),
        "w2": init(ks[8], (C, hid)), "b2": init(ks[9], (C,)),
        "w_ada": init(ks[10], (6 * C, C)), "b_ada": init(ks[11], (6 * C,)),
    }


# ---------------------------------------------------------------------------
# Pure-JAX f32 reference mirroring the PyTorch module (including .view mixing).
# ---------------------------------------------------------------------------
def dit_block_reference(x, cond, params, num_heads):
    B, L, C = x.shape
    Dh = C // num_heads
    ada = _silu(cond) @ params["w_ada"].T + params["b_ada"]
    a1, a2, be1, be2, g1, g2 = jnp.split(ada, 6, axis=1)

    def ln(t, w, bias):
        m = t.mean(-1, keepdims=True)
        v = jnp.square(t - m).mean(-1, keepdims=True)
        return (t - m) / jnp.sqrt(v + EPS) * w + bias

    h = ln(x, params["ln1_w"], params["ln1_b"])
    h = h * (1 + g1[:, None, :]) + be1[:, None, :]
    q = h @ params["wq"].T + params["bq"]
    k = h @ params["wk"].T + params["bk"]
    v = h @ params["wv"].T + params["bv"]
    sp = lambda t: t.reshape(B, L, num_heads, Dh).transpose(0, 2, 1, 3)
    q, k, v = sp(q), sp(k), sp(v)
    s = jnp.einsum("bhld,bhmd->bhlm", q, k) * (Dh ** -0.5)
    p = jax.nn.softmax(s, axis=-1)
    o = jnp.einsum("bhlm,bhmd->bhld", p, v)
    o = o.reshape(B, L, C)                  # torch's .view(B, L, -1) on [B,H,L,Dh]
    h = x + o * a1[:, None, :]
    x1 = h
    h = ln(h, params["ln2_w"], params["ln2_b"])
    h = h * (1 + g2[:, None, :]) + be2[:, None, :]
    h = _silu(h @ params["w1"].T + params["b1"])
    h = h @ params["w2"].T + params["b2"]
    return h * a2[:, None, :] + x1


if __name__ == "__main__":
    B, L, C, H = 2, 16, 128, 4          # batch, seq, embedding, heads
    key = jax.random.PRNGKey(0)
    kx, kc, kp = jax.random.split(key, 3)
    x = jax.random.normal(kx, (B, L, C), dtype=jnp.float32)
    cond = jax.random.normal(kc, (B, C), dtype=jnp.float32)
    params = make_params(kp, C)

    out = dit_block_forward(x, cond, params, H)
    out = jax.block_until_ready(out)

    ref = dit_block_reference(x, cond, params, H)
    assert out.shape == (B, L, C)
    max_err = float(jnp.max(jnp.abs(out - ref)))
    # bf16 MXU operands (f32 accumulation) introduce small drift vs the f32
    # reference; well within the tolerance below.
    assert jnp.allclose(out, ref, rtol=2e-2, atol=2e-2), f"max_err={max_err}"
    print("KERNEL_OK")
</pallas_src>

<mosaic_0001>
module attributes {stable_mosaic.version = 11 : i64} {
  func.func @_dit_kernel(%arg0: i32, %arg1: memref<32x128xf32, #tpu.memory_space<vmem>>, %arg2: memref<2x768xf32, #tpu.memory_space<vmem>>, %arg3: memref<1x128xf32, #tpu.memory_space<vmem>>, %arg4: memref<1x128xf32, #tpu.memory_space<vmem>>, %arg5: memref<1x128xf32, #tpu.memory_space<vmem>>, %arg6: memref<1x128xf32, #tpu.memory_space<vmem>>, %arg7: memref<128x384xbf16, #tpu.memory_space<vmem>>, %arg8: memref<1x384xf32, #tpu.memory_space<vmem>>, %arg9: memref<128x512xbf16, #tpu.memory_space<vmem>>, %arg10: memref<1x512xf32, #tpu.memory_space<vmem>>, %arg11: memref<512x128xbf16, #tpu.memory_space<vmem>>, %arg12: memref<1x128xf32, #tpu.memory_space<vmem>>, %arg13: memref<32x128xf32, #tpu.memory_space<vmem>>, %arg14: memref<64x32xf32, #tpu.memory_space<vmem>>) attributes {dimension_semantics = [#tpu.dimension_semantics<parallel>], iteration_bounds = array<i64: 1>, scalar_prefetch = 0 : i64, scratch_operands = 1 : i64, tpu.core_type = #tpu.core_type<tc>, window_params = [{transform_indices = @transform_0, window_bounds = array<i64: 32, 128>}, {transform_indices = @transform_1, window_bounds = array<i64: 2, 768>}, {pipeline_mode = #tpu.pipeline_mode<synchronous>, transform_indices = @transform_2, window_bounds = array<i64: 1, 128>}, {pipeline_mode = #tpu.pipeline_mode<synchronous>, transform_indices = @transform_3, window_bounds = array<i64: 1, 128>}, {pipeline_mode = #tpu.pipeline_mode<synchronous>, transform_indices = @transform_4, window_bounds = array<i64: 1, 128>}, {pipeline_mode = #tpu.pipeline_mode<synchronous>, transform_indices = @transform_5, window_bounds = array<i64: 1, 128>}, {pipeline_mode = #tpu.pipeline_mode<synchronous>, transform_indices = @transform_6, window_bounds = array<i64: 128, 384>}, {pipeline_mode = #tpu.pipeline_mode<synchronous>, transform_indices = @transform_7, window_bounds = array<i64: 1, 384>}, {pipeline_mode = #tpu.pipeline_mode<synchronous>, transform_indices = @transform_8, window_bounds = array<i64: 128, 512>}, {pipeline_mode = #tpu.pipeline_mode<synchronous>, transform_indices = @transform_9, window_bounds = array<i64: 1, 512>}, {pipeline_mode = #tpu.pipeline_mode<synchronous>, transform_indices = @transform_10, window_bounds = array<i64: 512, 128>}, {pipeline_mode = #tpu.pipeline_mode<synchronous>, transform_indices = @transform_11, window_bounds = array<i64: 1, 128>}, {transform_indices = @transform_12, window_bounds = array<i64: 32, 128>}]} {
    %c0 = arith.constant 0 : index
    %c0_0 = arith.constant 0 : index
    %0 = vector.load %arg2[%c0, %c0_0] : memref<2x768xf32, #tpu.memory_space<vmem>>, vector<1x768xf32>
    %1 = vector.shape_cast %0 : vector<1x768xf32> to vector<1x768xf32>
    %2 = vector.broadcast %1 : vector<1x768xf32> to vector<16x768xf32>
    %c1 = arith.constant 1 : index
    %c0_1 = arith.constant 0 : index
    %3 = vector.load %arg2[%c1, %c0_1] : memref<2x768xf32, #tpu.memory_space<vmem>>, vector<1x768xf32>
    %4 = vector.shape_cast %3 : vector<1x768xf32> to vector<1x768xf32>
    %5 = vector.broadcast %4 : vector<1x768xf32> to vector<16x768xf32>
    %6 = tpu.concatenate %2, %5 in 0 : vector<16x768xf32>, vector<16x768xf32> -> vector<32x768xf32>
    %7 = vector.extract_strided_slice %6 {offsets = [0, 0], sizes = [32, 128], strides = [1, 1]} : vector<32x768xf32> to vector<32x128xf32>
    %8 = vector.extract_strided_slice %6 {offsets = [0, 128], sizes = [32, 128], strides = [1, 1]} : vector<32x768xf32> to vector<32x128xf32>
    %9 = vector.extract_strided_slice %6 {offsets = [0, 256], sizes = [32, 128], strides = [1, 1]} : vector<32x768xf32> to vector<32x128xf32>
    %10 = vector.extract_strided_slice %6 {offsets = [0, 384], sizes = [32, 128], strides = [1, 1]} : vector<32x768xf32> to vector<32x128xf32>
    %11 = vector.extract_strided_slice %6 {offsets = [0, 512], sizes = [32, 128], strides = [1, 1]} : vector<32x768xf32> to vector<32x128xf32>
    %12 = vector.extract_strided_slice %6 {offsets = [0, 640], sizes = [32, 128], strides = [1, 1]} : vector<32x768xf32> to vector<32x128xf32>
    %c0_2 = arith.constant 0 : index
    %c0_3 = arith.constant 0 : index
    %13 = vector.load %arg1[%c0_2, %c0_3] : memref<32x128xf32, #tpu.memory_space<vmem>>, vector<32x128xf32>
    %c0_4 = arith.constant 0 : index
    %c0_5 = arith.constant 0 : index
    %14 = vector.load %arg3[%c0_4, %c0_5] : memref<1x128xf32, #tpu.memory_space<vmem>>, vector<1x128xf32>
    %c0_6 = arith.constant 0 : index
    %c0_7 = arith.constant 0 : index
    %15 = vector.load %arg4[%c0_6, %c0_7] : memref<1x128xf32, #tpu.memory_space<vmem>>, vector<1x128xf32>
    %cst = arith.constant dense<0.000000e+00> : vector<32xf32>
    %16 = vector.multi_reduction <add>, %13, %cst [1] : vector<32x128xf32> to vector<32xf32>
    %17 = vector.shape_cast %16 : vector<32xf32> to vector<32x1xf32>
    %cst_8 = arith.constant 1.280000e+02 : f32
    %18 = vector.broadcast %cst_8 : f32 to vector<32x1xf32>
    %19 = arith.divf %17, %18 : vector<32x1xf32>
    %20 = vector.broadcast %19 : vector<32x1xf32> to vector<32x128xf32>
    %21 = arith.subf %13, %20 : vector<32x128xf32>
    %22 = arith.mulf %21, %21 : vector<32x128xf32>
    %cst_9 = arith.constant dense<0.000000e+00> : vector<32xf32>
    %23 = vector.multi_reduction <add>, %22, %cst_9 [1] : vector<32x128xf32> to vector<32xf32>
    %24 = vector.shape_cast %23 : vector<32xf32> to vector<32x1xf32>
    %cst_10 = arith.constant 1.280000e+02 : f32
    %25 = vector.broadcast %cst_10 : f32 to vector<32x1xf32>
    %26 = arith.divf %24, %25 : vector<32x1xf32>
    %27 = vector.broadcast %19 : vector<32x1xf32> to vector<32x128xf32>
    %28 = arith.subf %13, %27 : vector<32x128xf32>
    %cst_11 = arith.constant 9.99999997E-7 : f32
    %29 = vector.broadcast %cst_11 : f32 to vector<32x1xf32>
    %30 = arith.addf %26, %29 : vector<32x1xf32>
    %31 = math.rsqrt %30 : vector<32x1xf32>
    %32 = vector.broadcast %31 : vector<32x1xf32> to vector<32x128xf32>
    %33 = arith.mulf %28, %32 : vector<32x128xf32>
    %34 = vector.broadcast %14 : vector<1x128xf32> to vector<32x128xf32>
    %35 = arith.mulf %33, %34 : vector<32x128xf32>
    %36 = vector.broadcast %15 : vector<1x128xf32> to vector<32x128xf32>
    %37 = arith.addf %35, %36 : vector<32x128xf32>
    %cst_12 = arith.constant 1.000000e+00 : f32
    %38 = vector.broadcast %cst_12 : f32 to vector<32x128xf32>
    %39 = arith.addf %38, %11 : vector<32x128xf32>
    %40 = arith.mulf %37, %39 : vector<32x128xf32>
    %41 = arith.addf %40, %9 : vector<32x128xf32>
    %42 = arith.truncf %41 : vector<32x128xf32> to vector<32x128xbf16>
    %c0_13 = arith.constant 0 : index
    %c0_14 = arith.constant 0 : index
    %43 = vector.load %arg7[%c0_13, %c0_14] : memref<128x384xbf16, #tpu.memory_space<vmem>>, vector<128x384xbf16>
    %cst_15 = arith.constant dense<0.000000e+00> : vector<32x384xf32>
    %44 = tpu.matmul %42, %43, %cst_15 {dimension_numbers = #tpu.dot_dimension_numbers<[1], [0], [0], [1], [0, 0, 1, 1], [], []>} : vector<32x128xbf16>, vector<128x384xbf16>, vector<32x384xf32> -> vector<32x384xf32>
    %c0_16 = arith.constant 0 : index
    %c0_17 = arith.constant 0 : index
    %45 = vector.load %arg8[%c0_16, %c0_17] : memref<1x384xf32, #tpu.memory_space<vmem>>, vector<1x384xf32>
    %46 = vector.broadcast %45 : vector<1x384xf32> to vector<32x384xf32>
    %47 = arith.addf %44, %46 : vector<32x384xf32>
    %48 = vector.extract_strided_slice %47 {offsets = [0, 0], sizes = [16, 32], strides = [1, 1]} : vector<32x384xf32> to vector<16x32xf32>
    %49 = arith.truncf %48 : vector<16x32xf32> to vector<16x32xbf16>
    %50 = vector.extract_strided_slice %47 {offsets = [0, 128], sizes = [16, 32], strides = [1, 1]} : vector<32x384xf32> to vector<16x32xf32>
    %51 = arith.truncf %50 : vector<16x32xf32> to vector<16x32xbf16>
    %52 = vector.extract_strided_slice %47 {offsets = [0, 256], sizes = [16, 32], strides = [1, 1]} : vector<32x384xf32> to vector<16x32xf32>
    %53 = arith.truncf %52 : vector<16x32xf32> to vector<16x32xbf16>
    %cst_18 = arith.constant dense<0.000000e+00> : vector<16x16xf32>
    %54 = tpu.matmul %49, %51, %cst_18 {dimension_numbers = #tpu.dot_dimension_numbers<[1], [1], [0], [0], [0, 0, 1, 0], [], []>} : vector<16x32xbf16>, vector<16x32xbf16>, vector<16x16xf32> -> vector<16x16xf32>
    %cst_19 = arith.constant 0.176776692 : f32
    %55 = vector.broadcast %cst_19 : f32 to vector<16x16xf32>
    %56 = arith.mulf %54, %55 : vector<16x16xf32>
    %cst_20 = arith.constant dense<0xFF800000> : vector<16xf32>
    %57 = vector.multi_reduction <maximumf>, %56, %cst_20 [1] : vector<16x16xf32> to vector<16xf32>
    %58 = vector.shape_cast %57 : vector<16xf32> to vector<16x1xf32>
    %59 = vector.broadcast %58 : vector<16x1xf32> to vector<16x16xf32>
    %60 = arith.subf %56, %59 : vector<16x16xf32>
    %61 = math.exp %60 : vector<16x16xf32>
    %cst_21 = arith.constant dense<0.000000e+00> : vector<16xf32>
    %62 = vector.multi_reduction <add>, %61, %cst_21 [1] : vector<16x16xf32> to vector<16xf32>
    %63 = vector.shape_cast %62 : vector<16xf32> to vector<16x1xf32>
    %64 = tpu.reciprocal %63 {approx = true} : vector<16x1xf32> -> vector<16x1xf32>
    %65 = vector.broadcast %64 : vector<16x1xf32> to vector<16x16xf32>
    %66 = arith.mulf %61, %65 : vector<16x16xf32>
    %67 = arith.truncf %66 : vector<16x16xf32> to vector<16x16xbf16>
    %cst_22 = arith.constant dense<0.000000e+00> : vector<16x32xf32>
    %68 = tpu.matmul %67, %53, %cst_22 {dimension_numbers = #tpu.dot_dimension_numbers<[1], [0], [0], [1], [0, 0, 1, 1], [], []>} : vector<16x16xbf16>, vector<16x32xbf16>, vector<16x32xf32> -> vector<16x32xf32>
    %c0_23 = arith.constant 0 : index
    %c0_24 = arith.constant 0 : index
    %69 = vector.load %arg14[%c0_23, %c0_24] : memref<64x32xf32, #tpu.memory_space<vmem>>, vector<16x32xf32>
    tpu.vector_store %arg14[%c0_23, %c0_24], %68 {strides = array<i32>} : memref<64x32xf32, #tpu.memory_space<vmem>>, vector<16x32xf32>,
    %70 = vector.extract_strided_slice %47 {offsets = [0, 32], sizes = [16, 32], strides = [1, 1]} : vector<32x384xf32> to vector<16x32xf32>
    %71 = arith.truncf %70 : vector<16x32xf32> to vector<16x32xbf16>
    %72 = vector.extract_strided_slice %47 {offsets = [0, 160], sizes = [16, 32], strides = [1, 1]} : vector<32x384xf32> to vector<16x32xf32>
    %73 = arith.truncf %72 : vector<16x32xf32> to vector<16x32xbf16>
    %74 = vector.extract_strided_slice %47 {offsets = [0, 288], sizes = [16, 32], strides = [1, 1]} : vector<32x384xf32> to vector<16x32xf32>
    %75 = arith.truncf %74 : vector<16x32xf32> to vector<16x32xbf16>
    %cst_25 = arith.constant dense<0.000000e+00> : vector<16x16xf32>
    %76 = tpu.matmul %71, %73, %cst_25 {dimension_numbers = #tpu.dot_dimension_numbers<[1], [1], [0], [0], [0, 0, 1, 0], [], []>} : vector<16x32xbf16>, vector<16x32xbf16>, vector<16x16xf32> -> vector<16x16xf32>
    %cst_26 = arith.constant 0.176776692 : f32
    %77 = vector.broadcast %cst_26 : f32 to vector<16x16xf32>
    %78 = arith.mulf %76, %77 : vector<16x16xf32>
    %cst_27 = arith.constant dense<0xFF800000> : vector<16xf32>
    %79 = vector.multi_reduction <maximumf>, %78, %cst_27 [1] : vector<16x16xf32> to vector<16xf32>
    %80 = vector.shape_cast %79 : vector<16xf32> to vector<16x1xf32>
    %81 = vector.broadcast %80 : vector<16x1xf32> to vector<16x16xf32>
    %82 = arith.subf %78, %81 : vector<16x16xf32>
    %83 = math.exp %82 : vector<16x16xf32>
    %cst_28 = arith.constant dense<0.000000e+00> : vector<16xf32>
    %84 = vector.multi_reduction <add>, %83, %cst_28 [1] : vector<16x16xf32> to vector<16xf32>
    %85 = vector.shape_cast %84 : vector<16xf32> to vector<16x1xf32>
    %86 = tpu.reciprocal %85 {approx = true} : vector<16x1xf32> -> vector<16x1xf32>
    %87 = vector.broadcast %86 : vector<16x1xf32> to vector<16x16xf32>
    %88 = arith.mulf %83, %87 : vector<16x16xf32>
    %89 = arith.truncf %88 : vector<16x16xf32> to vector<16x16xbf16>
    %cst_29 = arith.constant dense<0.000000e+00> : vector<16x32xf32>
    %90 = tpu.matmul %89, %75, %cst_29 {dimension_numbers = #tpu.dot_dimension_numbers<[1], [0], [0], [1], [0, 0, 1, 1], [], []>} : vector<16x16xbf16>, vector<16x32xbf16>, vector<16x32xf32> -> vector<16x32xf32>
    %c16 = arith.constant 16 : index
    %c0_30 = arith.constant 0 : index
    %91 = vector.load %arg14[%c16, %c0_30] : memref<64x32xf32, #tpu.memory_space<vmem>>, vector<16x32xf32>
    tpu.vector_store %arg14[%c16, %c0_30], %90 {strides = array<i32>} : memref<64x32xf32, #tpu.memory_space<vmem>>, vector<16x32xf32>,
    %92 = vector.extract_strided_slice %47 {offsets = [0, 64], sizes = [16, 32], strides = [1, 1]} : vector<32x384xf32> to vector<16x32xf32>
    %93 = arith.truncf %92 : vector<16x32xf32> to vector<16x32xbf16>
    %94 = vector.extract_strided_slice %47 {offsets = [0, 192], sizes = [16, 32], strides = [1, 1]} : vector<32x384xf32> to vector<16x32xf32>
    %95 = arith.truncf %94 : vector<16x32xf32> to vector<16x32xbf16>
    %96 = vector.extract_strided_slice %47 {offsets = [0, 320], sizes = [16, 32], strides = [1, 1]} : vector<32x384xf32> to vector<16x32xf32>
    %97 = arith.truncf %96 : vector<16x32xf32> to vector<16x32xbf16>
    %cst_31 = arith.constant dense<0.000000e+00> : vector<16x16xf32>
    %98 = tpu.matmul %93, %95, %cst_31 {dimension_numbers = #tpu.dot_dimension_numbers<[1], [1], [0], [0], [0, 0, 1, 0], [], []>} : vector<16x32xbf16>, vector<16x32xbf16>, vector<16x16xf32> -> vector<16x16xf32>
    %cst_32 = arith.constant 0.176776692 : f32
    %99 = vector.broadcast %cst_32 : f32 to vector<16x16xf32>
    %100 = arith.mulf %98, %99 : vector<16x16xf32>
    %cst_33 = arith.constant dense<0xFF800000> : vector<16xf32>
    %101 = vector.multi_reduction <maximumf>, %100, %cst_33 [1] : vector<16x16xf32> to vector<16xf32>
    %102 = vector.shape_cast %101 : vector<16xf32> to vector<16x1xf32>
    %103 = vector.broadcast %102 : vector<16x1xf32> to vector<16x16xf32>
    %104 = arith.subf %100, %103 : vector<16x16xf32>
    %105 = math.exp %104 : vector<16x16xf32>
    %cst_34 = arith.constant dense<0.000000e+00> : vector<16xf32>
    %106 = vector.multi_reduction <add>, %105, %cst_34 [1] : vector<16x16xf32> to vector<16xf32>
    %107 = vector.shape_cast %106 : vector<16xf32> to vector<16x1xf32>
    %108 = tpu.reciprocal %107 {approx = true} : vector<16x1xf32> -> vector<16x1xf32>
    %109 = vector.broadcast %108 : vector<16x1xf32> to vector<16x16xf32>
    %110 = arith.mulf %105, %109 : vector<16x16xf32>
    %111 = arith.truncf %110 : vector<16x16xf32> to vector<16x16xbf16>
    %cst_35 = arith.constant dense<0.000000e+00> : vector<16x32xf32>
    %112 = tpu.matmul %111, %97, %cst_35 {dimension_numbers = #tpu.dot_dimension_numbers<[1], [0], [0], [1], [0, 0, 1, 1], [], []>} : vector<16x16xbf16>, vector<16x32xbf16>, vector<16x32xf32> -> vector<16x32xf32>
    %c32 = arith.constant 32 : index
    %c0_36 = arith.constant 0 : index
    %113 = vector.load %arg14[%c32, %c0_36] : memref<64x32xf32, #tpu.memory_space<vmem>>, vector<16x32xf32>
    tpu.vector_store %arg14[%c32, %c0_36], %112 {strides = array<i32>} : memref<64x32xf32, #tpu.memory_space<vmem>>, vector<16x32xf32>,
    %114 = vector.extract_strided_slice %47 {offsets = [0, 96], sizes = [16, 32], strides = [1, 1]} : vector<32x384xf32> to vector<16x32xf32>
    %115 = arith.truncf %114 : vector<16x32xf32> to vector<16x32xbf16>
    %116 = vector.extract_strided_slice %47 {offsets = [0, 224], sizes = [16, 32], strides = [1, 1]} : vector<32x384xf32> to vector<16x32xf32>
    %117 = arith.truncf %116 : vector<16x32xf32> to vector<16x32xbf16>
    %118 = vector.extract_strided_slice %47 {offsets = [0, 352], sizes = [16, 32], strides = [1, 1]} : vector<32x384xf32> to vector<16x32xf32>
    %119 = arith.truncf %118 : vector<16x32xf32> to vector<16x32xbf16>
    %cst_37 = arith.constant dense<0.000000e+00> : vector<16x16xf32>
    %120 = tpu.matmul %115, %117, %cst_37 {dimension_numbers = #tpu.dot_dimension_numbers<[1], [1], [0], [0], [0, 0, 1, 0], [], []>} : vector<16x32xbf16>, vector<16x32xbf16>, vector<16x16xf32> -> vector<16x16xf32>
    %cst_38 = arith.constant 0.176776692 : f32
    %121 = vector.broadcast %cst_38 : f32 to vector<16x16xf32>
    %122 = arith.mulf %120, %121 : vector<16x16xf32>
    %cst_39 = arith.constant dense<0xFF800000> : vector<16xf32>
    %123 = vector.multi_reduction <maximumf>, %122, %cst_39 [1] : vector<16x16xf32> to vector<16xf32>
    %124 = vector.shape_cast %123 : vector<16xf32> to vector<16x1xf32>
    %125 = vector.broadcast %124 : vector<16x1xf32> to vector<16x16xf32>
    %126 = arith.subf %122, %125 : vector<16x16xf32>
    %127 = math.exp %126 : vector<16x16xf32>
    %cst_40 = arith.constant dense<0.000000e+00> : vector<16xf32>
    %128 = vector.multi_reduction <add>, %127, %cst_40 [1] : vector<16x16xf32> to vector<16xf32>
    %129 = vector.shape_cast %128 : vector<16xf32> to vector<16x1xf32>
    %130 = tpu.reciprocal %129 {approx = true} : vector<16x1xf32> -> vector<16x1xf32>
    %131 = vector.broadcast %130 : vector<16x1xf32> to vector<16x16xf32>
    %132 = arith.mulf %127, %131 : vector<16x16xf32>
    %133 = arith.truncf %132 : vector<16x16xf32> to vector<16x16xbf16>
    %cst_41 = arith.constant dense<0.000000e+00> : vector<16x32xf32>
    %134 = tpu.matmul %133, %119, %cst_41 {dimension_numbers = #tpu.dot_dimension_numbers<[1], [0], [0], [1], [0, 0, 1, 1], [], []>} : vector<16x16xbf16>, vector<16x32xbf16>, vector<16x32xf32> -> vector<16x32xf32>
    %c48 = arith.constant 48 : index
    %c0_42 = arith.constant 0 : index
    %135 = vector.load %arg14[%c48, %c0_42] : memref<64x32xf32, #tpu.memory_space<vmem>>, vector<16x32xf32>
    tpu.vector_store %arg14[%c48, %c0_42], %134 {strides = array<i32>} : memref<64x32xf32, #tpu.memory_space<vmem>>, vector<16x32xf32>,
    %c0_43 = arith.constant 0 : index
    %c0_44 = arith.constant 0 : index
    %136 = tpu.strided_load %arg14[%c0_43, %c0_44] {strides = array<i32: 4, 1>} : memref<64x32xf32, #tpu.memory_space<vmem>>, vector<16x32xf32>
    %c1_45 = arith.constant 1 : index
    %c0_46 = arith.constant 0 : index
    %137 = tpu.strided_load %arg14[%c1_45, %c0_46] {strides = array<i32: 4, 1>} : memref<64x32xf32, #tpu.memory_space<vmem>>, vector<16x32xf32>
    %c2 = arith.constant 2 : index
    %c0_47 = arith.constant 0 : index
    %138 = tpu.strided_load %arg14[%c2, %c0_47] {strides = array<i32: 4, 1>} : memref<64x32xf32, #tpu.memory_space<vmem>>, vector<16x32xf32>
    %c3 = arith.constant 3 : index
    %c0_48 = arith.constant 0 : index
    %139 = tpu.strided_load %arg14[%c3, %c0_48] {strides = array<i32: 4, 1>} : memref<64x32xf32, #tpu.memory_space<vmem>>, vector<16x32xf32>
    %140 = tpu.concatenate %136, %137, %138, %139 in 1 : vector<16x32xf32>, vector<16x32xf32>, vector<16x32xf32>, vector<16x32xf32> -> vector<16x128xf32>
    %141 = vector.extract_strided_slice %47 {offsets = [16, 0], sizes = [16, 32], strides = [1, 1]} : vector<32x384xf32> to vector<16x32xf32>
    %142 = arith.truncf %141 : vector<16x32xf32> to vector<16x32xbf16>
    %143 = vector.extract_strided_slice %47 {offsets = [16, 128], sizes = [16, 32], strides = [1, 1]} : vector<32x384xf32> to vector<16x32xf32>
    %144 = arith.truncf %143 : vector<16x32xf32> to vector<16x32xbf16>
    %145 = vector.extract_strided_slice %47 {offsets = [16, 256], sizes = [16, 32], strides = [1, 1]} : vector<32x384xf32> to vector<16x32xf32>
    %146 = arith.truncf %145 : vector<16x32xf32> to vector<16x32xbf16>
    %cst_49 = arith.constant dense<0.000000e+00> : vector<16x16xf32>
    %147 = tpu.matmul %142, %144, %cst_49 {dimension_numbers = #tpu.dot_dimension_numbers<[1], [1], [0], [0], [0, 0, 1, 0], [], []>} : vector<16x32xbf16>, vector<16x32xbf16>, vector<16x16xf32> -> vector<16x16xf32>
    %cst_50 = arith.constant 0.176776692 : f32
    %148 = vector.broadcast %cst_50 : f32 to vector<16x16xf32>
    %149 = arith.mulf %147, %148 : vector<16x16xf32>
    %cst_51 = arith.constant dense<0xFF800000> : vector<16xf32>
    %150 = vector.multi_reduction <maximumf>, %149, %cst_51 [1] : vector<16x16xf32> to vector<16xf32>
    %151 = vector.shape_cast %150 : vector<16xf32> to vector<16x1xf32>
    %152 = vector.broadcast %151 : vector<16x1xf32> to vector<16x16xf32>
    %153 = arith.subf %149, %152 : vector<16x16xf32>
    %154 = math.exp %153 : vector<16x16xf32>
    %cst_52 = arith.constant dense<0.000000e+00> : vector<16xf32>
    %155 = vector.multi_reduction <add>, %154, %cst_52 [1] : vector<16x16xf32> to vector<16xf32>
    %156 = vector.shape_cast %155 : vector<16xf32> to vector<16x1xf32>
    %157 = tpu.reciprocal %156 {approx = true} : vector<16x1xf32> -> vector<16x1xf32>
    %158 = vector.broadcast %157 : vector<16x1xf32> to vector<16x16xf32>
    %159 = arith.mulf %154, %158 : vector<16x16xf32>
    %160 = arith.truncf %159 : vector<16x16xf32> to vector<16x16xbf16>
    %cst_53 = arith.constant dense<0.000000e+00> : vector<16x32xf32>
    %161 = tpu.matmul %160, %146, %cst_53 {dimension_numbers = #tpu.dot_dimension_numbers<[1], [0], [0], [1], [0, 0, 1, 1], [], []>} : vector<16x16xbf16>, vector<16x32xbf16>, vector<16x32xf32> -> vector<16x32xf32>
    %c0_54 = arith.constant 0 : index
    %c0_55 = arith.constant 0 : index
    %162 = vector.load %arg14[%c0_54, %c0_55] : memref<64x32xf32, #tpu.memory_space<vmem>>, vector<16x32xf32>
    tpu.vector_store %arg14[%c0_54, %c0_55], %161 {strides = array<i32>} : memref<64x32xf32, #tpu.memory_space<vmem>>, vector<16x32xf32>,
    %163 = vector.extract_strided_slice %47 {offsets = [16, 32], sizes = [16, 32], strides = [1, 1]} : vector<32x384xf32> to vector<16x32xf32>
    %164 = arith.truncf %163 : vector<16x32xf32> to vector<16x32xbf16>
    %165 = vector.extract_strided_slice %47 {offsets = [16, 160], sizes = [16, 32], strides = [1, 1]} : vector<32x384xf32> to vector<16x32xf32>
    %166 = arith.truncf %165 : vector<16x32xf32> to vector<16x32xbf16>
    %167 = vector.extract_strided_slice %47 {offsets = [16, 288], sizes = [16, 32], strides = [1, 1]} : vector<32x384xf32> to vector<16x32xf32>
    %168 = arith.truncf %167 : vector<16x32xf32> to vector<16x32xbf16>
    %cst_56 = arith.constant dense<0.000000e+00> : vector<16x16xf32>
    %169 = tpu.matmul %164, %166, %cst_56 {dimension_numbers = #tpu.dot_dimension_numbers<[1], [1], [0], [0], [0, 0, 1, 0], [], []>} : vector<16x32xbf16>, vector<16x32xbf16>, vector<16x16xf32> -> vector<16x16xf32>
    %cst_57 = arith.constant 0.176776692 : f32
    %170 = vector.broadcast %cst_57 : f32 to vector<16x16xf32>
    %171 = arith.mulf %169, %170 : vector<16x16xf32>
    %cst_58 = arith.constant dense<0xFF800000> : vector<16xf32>
    %172 = vector.multi_reduction <maximumf>, %171, %cst_58 [1] : vector<16x16xf32> to vector<16xf32>
    %173 = vector.shape_cast %172 : vector<16xf32> to vector<16x1xf32>
    %174 = vector.broadcast %173 : vector<16x1xf32> to vector<16x16xf32>
    %175 = arith.subf %171, %174 : vector<16x16xf32>
    %176 = math.exp %175 : vector<16x16xf32>
    %cst_59 = arith.constant dense<0.000000e+00> : vector<16xf32>
    %177 = vector.multi_reduction <add>, %176, %cst_59 [1] : vector<16x16xf32> to vector<16xf32>
    %178 = vector.shape_cast %177 : vector<16xf32> to vector<16x1xf32>
    %179 = tpu.reciprocal %178 {approx = true} : vector<16x1xf32> -> vector<16x1xf32>
    %180 = vector.broadcast %179 : vector<16x1xf32> to vector<16x16xf32>
    %181 = arith.mulf %176, %180 : vector<16x16xf32>
    %182 = arith.truncf %181 : vector<16x16xf32> to vector<16x16xbf16>
    %cst_60 = arith.constant dense<0.000000e+00> : vector<16x32xf32>
    %183 = tpu.matmul %182, %168, %cst_60 {dimension_numbers = #tpu.dot_dimension_numbers<[1], [0], [0], [1], [0, 0, 1, 1], [], []>} : vector<16x16xbf16>, vector<16x32xbf16>, vector<16x32xf32> -> vector<16x32xf32>
    %c16_61 = arith.constant 16 : index
    %c0_62 = arith.constant 0 : index
    %184 = vector.load %arg14[%c16_61, %c0_62] : memref<64x32xf32, #tpu.memory_space<vmem>>, vector<16x32xf32>
    tpu.vector_store %arg14[%c16_61, %c0_62], %183 {strides = array<i32>} : memref<64x32xf32, #tpu.memory_space<vmem>>, vector<16x32xf32>,
    %185 = vector.extract_strided_slice %47 {offsets = [16, 64], sizes = [16, 32], strides = [1, 1]} : vector<32x384xf32> to vector<16x32xf32>
    %186 = arith.truncf %185 : vector<16x32xf32> to vector<16x32xbf16>
    %187 = vector.extract_strided_slice %47 {offsets = [16, 192], sizes = [16, 32], strides = [1, 1]} : vector<32x384xf32> to vector<16x32xf32>
    %188 = arith.truncf %187 : vector<16x32xf32> to vector<16x32xbf16>
    %189 = vector.extract_strided_slice %47 {offsets = [16, 320], sizes = [16, 32], strides = [1, 1]} : vector<32x384xf32> to vector<16x32xf32>
    %190 = arith.truncf %189 : vector<16x32xf32> to vector<16x32xbf16>
    %cst_63 = arith.constant dense<0.000000e+00> : vector<16x16xf32>
    %191 = tpu.matmul %186, %188, %cst_63 {dimension_numbers = #tpu.dot_dimension_numbers<[1], [1], [0], [0], [0, 0, 1, 0], [], []>} : vector<16x32xbf16>, vector<16x32xbf16>, vector<16x16xf32> -> vector<16x16xf32>
    %cst_64 = arith.constant 0.176776692 : f32
    %192 = vector.broadcast %cst_64 : f32 to vector<16x16xf32>
    %193 = arith.mulf %191, %192 : vector<16x16xf32>
    %cst_65 = arith.constant dense<0xFF800000> : vector<16xf32>
    %194 = vector.multi_reduction <maximumf>, %193, %cst_65 [1] : vector<16x16xf32> to vector<16xf32>
    %195 = vector.shape_cast %194 : vector<16xf32> to vector<16x1xf32>
    %196 = vector.broadcast %195 : vector<16x1xf32> to vector<16x16xf32>
    %197 = arith.subf %193, %196 : vector<16x16xf32>
    %198 = math.exp %197 : vector<16x16xf32>
    %cst_66 = arith.constant dense<0.000000e+00> : vector<16xf32>
    %199 = vector.multi_reduction <add>, %198, %cst_66 [1] : vector<16x16xf32> to vector<16xf32>
    %200 = vector.shape_cast %199 : vector<16xf32> to vector<16x1xf32>
    %201 = tpu.reciprocal %200 {approx = true} : vector<16x1xf32> -> vector<16x1xf32>
    %202 = vector.broadcast %201 : vector<16x1xf32> to vector<16x16xf32>
    %203 = arith.mulf %198, %202 : vector<16x16xf32>
    %204 = arith.truncf %203 : vector<16x16xf32> to vector<16x16xbf16>
    %cst_67 = arith.constant dense<0.000000e+00> : vector<16x32xf32>
    %205 = tpu.matmul %204, %190, %cst_67 {dimension_numbers = #tpu.dot_dimension_numbers<[1], [0], [0], [1], [0, 0, 1, 1], [], []>} : vector<16x16xbf16>, vector<16x32xbf16>, vector<16x32xf32> -> vector<16x32xf32>
    %c32_68 = arith.constant 32 : index
    %c0_69 = arith.constant 0 : index
    %206 = vector.load %arg14[%c32_68, %c0_69] : memref<64x32xf32, #tpu.memory_space<vmem>>, vector<16x32xf32>
    tpu.vector_store %arg14[%c32_68, %c0_69], %205 {strides = array<i32>} : memref<64x32xf32, #tpu.memory_space<vmem>>, vector<16x32xf32>,
    %207 = vector.extract_strided_slice %47 {offsets = [16, 96], sizes = [16, 32], strides = [1, 1]} : vector<32x384xf32> to vector<16x32xf32>
    %208 = arith.truncf %207 : vector<16x32xf32> to vector<16x32xbf16>
    %209 = vector.extract_strided_slice %47 {offsets = [16, 224], sizes = [16, 32], strides = [1, 1]} : vector<32x384xf32> to vector<16x32xf32>
    %210 = arith.truncf %209 : vector<16x32xf32> to vector<16x32xbf16>
    %211 = vector.extract_strided_slice %47 {offsets = [16, 352], sizes = [16, 32], strides = [1, 1]} : vector<32x384xf32> to vector<16x32xf32>
    %212 = arith.truncf %211 : vector<16x32xf32> to vector<16x32xbf16>
    %cst_70 = arith.constant dense<0.000000e+00> : vector<16x16xf32>
    %213 = tpu.matmul %208, %210, %cst_70 {dimension_numbers = #tpu.dot_dimension_numbers<[1], [1], [0], [0], [0, 0, 1, 0], [], []>} : vector<16x32xbf16>, vector<16x32xbf16>, vector<16x16xf32> -> vector<16x16xf32>
    %cst_71 = arith.constant 0.176776692 : f32
    %214 = vector.broadcast %cst_71 : f32 to vector<16x16xf32>
    %215 = arith.mulf %213, %214 : vector<16x16xf32>
    %cst_72 = arith.constant dense<0xFF800000> : vector<16xf32>
    %216 = vector.multi_reduction <maximumf>, %215, %cst_72 [1] : vector<16x16xf32> to vector<16xf32>
    %217 = vector.shape_cast %216 : vector<16xf32> to vector<16x1xf32>
    %218 = vector.broadcast %217 : vector<16x1xf32> to vector<16x16xf32>
    %219 = arith.subf %215, %218 : vector<16x16xf32>
    %220 = math.exp %219 : vector<16x16xf32>
    %cst_73 = arith.constant dense<0.000000e+00> : vector<16xf32>
    %221 = vector.multi_reduction <add>, %220, %cst_73 [1] : vector<16x16xf32> to vector<16xf32>
    %222 = vector.shape_cast %221 : vector<16xf32> to vector<16x1xf32>
    %223 = tpu.reciprocal %222 {approx = true} : vector<16x1xf32> -> vector<16x1xf32>
    %224 = vector.broadcast %223 : vector<16x1xf32> to vector<16x16xf32>
    %225 = arith.mulf %220, %224 : vector<16x16xf32>
    %226 = arith.truncf %225 : vector<16x16xf32> to vector<16x16xbf16>
    %cst_74 = arith.constant dense<0.000000e+00> : vector<16x32xf32>
    %227 = tpu.matmul %226, %212, %cst_74 {dimension_numbers = #tpu.dot_dimension_numbers<[1], [0], [0], [1], [0, 0, 1, 1], [], []>} : vector<16x16xbf16>, vector<16x32xbf16>, vector<16x32xf32> -> vector<16x32xf32>
    %c48_75 = arith.constant 48 : index
    %c0_76 = arith.constant 0 : index
    %228 = vector.load %arg14[%c48_75, %c0_76] : memref<64x32xf32, #tpu.memory_space<vmem>>, vector<16x32xf32>
    tpu.vector_store %arg14[%c48_75, %c0_76], %227 {strides = array<i32>} : memref<64x32xf32, #tpu.memory_space<vmem>>, vector<16x32xf32>,
    %c0_77 = arith.constant 0 : index
    %c0_78 = arith.constant 0 : index
    %229 = tpu.strided_load %arg14[%c0_77, %c0_78] {strides = array<i32: 4, 1>} : memref<64x32xf32, #tpu.memory_space<vmem>>, vector<16x32xf32>
    %c1_79 = arith.constant 1 : index
    %c0_80 = arith.constant 0 : index
    %230 = tpu.strided_load %arg14[%c1_79, %c0_80] {strides = array<i32: 4, 1>} : memref<64x32xf32, #tpu.memory_space<vmem>>, vector<16x32xf32>
    %c2_81 = arith.constant 2 : index
    %c0_82 = arith.constant 0 : index
    %231 = tpu.strided_load %arg14[%c2_81, %c0_82] {strides = array<i32: 4, 1>} : memref<64x32xf32, #tpu.memory_space<vmem>>, vector<16x32xf32>
    %c3_83 = arith.constant 3 : index
    %c0_84 = arith.constant 0 : index
    %232 = tpu.strided_load %arg14[%c3_83, %c0_84] {strides = array<i32: 4, 1>} : memref<64x32xf32, #tpu.memory_space<vmem>>, vector<16x32xf32>
    %233 = tpu.concatenate %229, %230, %231, %232 in 1 : vector<16x32xf32>, vector<16x32xf32>, vector<16x32xf32>, vector<16x32xf32> -> vector<16x128xf32>
    %234 = tpu.concatenate %140, %233 in 0 : vector<16x128xf32>, vector<16x128xf32> -> vector<32x128xf32>
    %235 = arith.mulf %234, %7 : vector<32x128xf32>
    %236 = arith.addf %13, %235 : vector<32x128xf32>
    %c0_85 = arith.constant 0 : index
    %c0_86 = arith.constant 0 : index
    %237 = vector.load %arg5[%c0_85, %c0_86] : memref<1x128xf32, #tpu.memory_space<vmem>>, vector<1x128xf32>
    %c0_87 = arith.constant 0 : index
    %c0_88 = arith.constant 0 : index
    %238 = vector.load %arg6[%c0_87, %c0_88] : memref<1x128xf32, #tpu.memory_space<vmem>>, vector<1x128xf32>
    %cst_89 = arith.constant dense<0.000000e+00> : vector<32xf32>
    %239 = vector.multi_reduction <add>, %236, %cst_89 [1] : vector<32x128xf32> to vector<32xf32>
    %240 = vector.shape_cast %239 : vector<32xf32> to vector<32x1xf32>
    %cst_90 = arith.constant 1.280000e+02 : f32
    %241 = vector.broadcast %cst_90 : f32 to vector<32x1xf32>
    %242 = arith.divf %240, %241 : vector<32x1xf32>
    %243 = vector.broadcast %242 : vector<32x1xf32> to vector<32x128xf32>
    %244 = arith.subf %236, %243 : vector<32x128xf32>
    %245 = arith.mulf %244, %244 : vector<32x128xf32>
    %cst_91 = arith.constant dense<0.000000e+00> : vector<32xf32>
    %246 = vector.multi_reduction <add>, %245, %cst_91 [1] : vector<32x128xf32> to vector<32xf32>
    %247 = vector.shape_cast %246 : vector<32xf32> to vector<32x1xf32>
    %cst_92 = arith.constant 1.280000e+02 : f32
    %248 = vector.broadcast %cst_92 : f32 to vector<32x1xf32>
    %249 = arith.divf %247, %248 : vector<32x1xf32>
    %250 = vector.broadcast %242 : vector<32x1xf32> to vector<32x128xf32>
    %251 = arith.subf %236, %250 : vector<32x128xf32>
    %cst_93 = arith.constant 9.99999997E-7 : f32
    %252 = vector.broadcast %cst_93 : f32 to vector<32x1xf32>
    %253 = arith.addf %249, %252 : vector<32x1xf32>
    %254 = math.rsqrt %253 : vector<32x1xf32>
    %255 = vector.broadcast %254 : vector<32x1xf32> to vector<32x128xf32>
    %256 = arith.mulf %251, %255 : vector<32x128xf32>
    %257 = vector.broadcast %237 : vector<1x128xf32> to vector<32x128xf32>
    %258 = arith.mulf %256, %257 : vector<32x128xf32>
    %259 = vector.broadcast %238 : vector<1x128xf32> to vector<32x128xf32>
    %260 = arith.addf %258, %259 : vector<32x128xf32>
    %cst_94 = arith.constant 1.000000e+00 : f32
    %261 = vector.broadcast %cst_94 : f32 to vector<32x128xf32>
    %262 = arith.addf %261, %12 : vector<32x128xf32>
    %263 = arith.mulf %260, %262 : vector<32x128xf32>
    %264 = arith.addf %263, %10 : vector<32x128xf32>
    %265 = arith.truncf %264 : vector<32x128xf32> to vector<32x128xbf16>
    %c0_95 = arith.constant 0 : index
    %c0_96 = arith.constant 0 : index
    %266 = vector.load %arg9[%c0_95, %c0_96] : memref<128x512xbf16, #tpu.memory_space<vmem>>, vector<128x512xbf16>
    %cst_97 = arith.constant dense<0.000000e+00> : vector<32x512xf32>
    %267 = tpu.matmul %265, %266, %cst_97 {dimension_numbers = #tpu.dot_dimension_numbers<[1], [0], [0], [1], [0, 0, 1, 1], [], []>} : vector<32x128xbf16>, vector<128x512xbf16>, vector<32x512xf32> -> vector<32x512xf32>
    %c0_98 = arith.constant 0 : index
    %c0_99 = arith.constant 0 : index
    %268 = vector.load %arg10[%c0_98, %c0_99] : memref<1x512xf32, #tpu.memory_space<vmem>>, vector<1x512xf32>
    %269 = vector.broadcast %268 : vector<1x512xf32> to vector<32x512xf32>
    %270 = arith.addf %267, %269 : vector<32x512xf32>
    %271 = arith.negf %270 : vector<32x512xf32>
    %272 = math.exp %271 : vector<32x512xf32>
    %cst_100 = arith.constant 1.000000e+00 : f32
    %273 = vector.broadcast %cst_100 : f32 to vector<32x512xf32>
    %274 = arith.addf %273, %272 : vector<32x512xf32>
    %275 = arith.divf %273, %274 : vector<32x512xf32>
    %276 = arith.mulf %270, %275 : vector<32x512xf32>
    %277 = arith.truncf %276 : vector<32x512xf32> to vector<32x512xbf16>
    %c0_101 = arith.constant 0 : index
    %c0_102 = arith.constant 0 : index
    %278 = vector.load %arg11[%c0_101, %c0_102] : memref<512x128xbf16, #tpu.memory_space<vmem>>, vector<512x128xbf16>
    %cst_103 = arith.constant dense<0.000000e+00> : vector<32x128xf32>
    %279 = tpu.matmul %277, %278, %cst_103 {dimension_numbers = #tpu.dot_dimension_numbers<[1], [0], [0], [1], [0, 0, 1, 1], [], []>} : vector<32x512xbf16>, vector<512x128xbf16>, vector<32x128xf32> -> vector<32x128xf32>
    %c0_104 = arith.constant 0 : index
    %c0_105 = arith.constant 0 : index
    %280 = vector.load %arg12[%c0_104, %c0_105] : memref<1x128xf32, #tpu.memory_space<vmem>>, vector<1x128xf32>
    %281 = vector.broadcast %280 : vector<1x128xf32> to vector<32x128xf32>
    %282 = arith.addf %279, %281 : vector<32x128xf32>
    %283 = arith.mulf %282, %8 : vector<32x128xf32>
    %284 = arith.addf %283, %236 : vector<32x128xf32>
    %c0_106 = arith.constant 0 : index
    %c0_107 = arith.constant 0 : index
    %285 = vector.load %arg13[%c0_106, %c0_107] : memref<32x128xf32, #tpu.memory_space<vmem>>, vector<32x128xf32>
    tpu.vector_store %arg13[%c0_106, %c0_107], %284 {strides = array<i32>} : memref<32x128xf32, #tpu.memory_space<vmem>>, vector<32x128xf32>,
    return
  }
  func.func @transform_0(%arg0: i32) -> (i32, i32) {
    %c0_i32 = arith.constant 0 : i32
    %c0_i32_0 = arith.constant 0 : i32
    return %arg0, %c0_i32 : i32, i32
  }
  func.func @transform_1(%arg0: i32) -> (i32, i32) {
    %c0_i32 = arith.constant 0 : i32
    %c0_i32_0 = arith.constant 0 : i32
    return %arg0, %c0_i32 : i32, i32
  }
  func.func @transform_2(%arg0: i32) -> (i32, i32) {
    %c0_i32 = arith.constant 0 : i32
    %c0_i32_0 = arith.constant 0 : i32
    %c0_i32_1 = arith.constant 0 : i32
    return %c0_i32, %c0_i32_0 : i32, i32
  }
  func.func @transform_3(%arg0: i32) -> (i32, i32) {
    %c0_i32 = arith.constant 0 : i32
    %c0_i32_0 = arith.constant 0 : i32
    %c0_i32_1 = arith.constant 0 : i32
    return %c0_i32, %c0_i32_0 : i32, i32
  }
  func.func @transform_4(%arg0: i32) -> (i32, i32) {
    %c0_i32 = arith.constant 0 : i32
    %c0_i32_0 = arith.constant 0 : i32
    %c0_i32_1 = arith.constant 0 : i32
    return %c0_i32, %c0_i32_0 : i32, i32
  }
  func.func @transform_5(%arg0: i32) -> (i32, i32) {
    %c0_i32 = arith.constant 0 : i32
    %c0_i32_0 = arith.constant 0 : i32
    %c0_i32_1 = arith.constant 0 : i32
    return %c0_i32, %c0_i32_0 : i32, i32
  }
  func.func @transform_6(%arg0: i32) -> (i32, i32) {
    %c0_i32 = arith.constant 0 : i32
    %c0_i32_0 = arith.constant 0 : i32
    %c0_i32_1 = arith.constant 0 : i32
    return %c0_i32, %c0_i32_0 : i32, i32
  }
  func.func @transform_7(%arg0: i32) -> (i32, i32) {
    %c0_i32 = arith.constant 0 : i32
    %c0_i32_0 = arith.constant 0 : i32
    %c0_i32_1 = arith.constant 0 : i32
    return %c0_i32, %c0_i32_0 : i32, i32
  }
  func.func @transform_8(%arg0: i32) -> (i32, i32) {
    %c0_i32 = arith.constant 0 : i32
    %c0_i32_0 = arith.constant 0 : i32
    %c0_i32_1 = arith.constant 0 : i32
    return %c0_i32, %c0_i32_0 : i32, i32
  }
  func.func @transform_9(%arg0: i32) -> (i32, i32) {
    %c0_i32 = arith.constant 0 : i32
    %c0_i32_0 = arith.constant 0 : i32
    %c0_i32_1 = arith.constant 0 : i32
    return %c0_i32, %c0_i32_0 : i32, i32
  }
  func.func @transform_10(%arg0: i32) -> (i32, i32) {
    %c0_i32 = arith.constant 0 : i32
    %c0_i32_0 = arith.constant 0 : i32
    %c0_i32_1 = arith.constant 0 : i32
    return %c0_i32, %c0_i32_0 : i32, i32
  }
  func.func @transform_11(%arg0: i32) -> (i32, i32) {
    %c0_i32 = arith.constant 0 : i32
    %c0_i32_0 = arith.constant 0 : i32
    %c0_i32_1 = arith.constant 0 : i32
    return %c0_i32, %c0_i32_0 : i32, i32
  }
  func.func @transform_12(%arg0: i32) -> (i32, i32) {
    %c0_i32 = arith.constant 0 : i32
    %c0_i32_0 = arith.constant 0 : i32
    return %arg0, %c0_i32 : i32, i32
  }
}

</mosaic_0001>

<bundles_post_ra>
// kernel: tpu_custom_call.1
= control target key start
LH: loop header
LB: loop body
LE: loop exit
PB: predicated region body
PF: predicated region fallthrough
CT: control target
= control target key end

     0   :  { %17 = vsyncpa [#allocation4], 0  ;;  %s3969_s0 = inlined_call_operand.hbm [shape: f32[32,128], index: 0, kind: input, shape index: {}]   ;;  %s3970_s1 = inlined_call_operand.hbm [shape: f32[2,768], index: 1, kind: input, shape index: {}]   ;;  %s3971_s2 = inlined_call_operand.hbm [shape: f32[1,128], index: 2, kind: input, shape index: {}]   ;;  %s3972_s3 = inlined_call_operand.vmem [shape: f32[1,128], index: 3, kind: input, shape index: {}]   ;;  %s3973_s4 = inlined_call_operand.vmem [shape: f32[1,128], index: 4, kind: input, shape index: {}]   ;;  %s3974_s5 = inlined_call_operand.vmem [shape: f32[1,128], index: 5, kind: input, shape index: {}]   ;;  %s3975_s6 = inlined_call_operand.hbm [shape: bf16[128,384], index: 6, kind: input, shape index: {}]   ;;  %s3976_s7 = inlined_call_operand.vmem [shape: f32[1,384], index: 7, kind: input, shape index: {}]   ;;  %s3977_s8 = inlined_call_operand.hbm [shape: bf16[128,512], index: 8, kind: input, shape index: {}]   ;;  %s3978_s9 = inlined_call_operand.vmem [shape: f32[1,512], index: 9, kind: input, shape index: {}]   ;;  %s3979_s10 = inlined_call_operand.hbm [shape: bf16[512,128], index: 10, kind: input, shape index: {}]   ;;  %s3980_s11 = inlined_call_operand.vmem [shape: f32[1,128], index: 11, kind: input, shape index: {}]   ;;  %s3981_s12 = inlined_call_operand.hbm [shape: f32[32,128], index: 12, kind: output, shape index: {}]  }
   0x1   :  { %18 = vsyncpa [#allocation7], 0 }
   0x2   :  { %19 = vsyncpa [#allocation10], 0 }
   0x3   :  { %20 = vsyncpa [#allocation13], 0 }
   0x4   :  { %21 = vsyncpa [#allocation5], 0  ;;  %s3337_s21 = smov [#allocation6]   ;;  %s3338_s23 = smov [#allocation9]  }
   0x5   :  { %s40_s22 = sshll.u32 %s3337_s21, 4  ;;  %s65_s24 = sshll.u32 %s3338_s23, 4  ;;  %s41_s22 = int_to_ptr.vmem [resolvable:$true] %s40_s22  ;;  %s3422_s24 = int_to_ptr.vmem [resolvable:$true] %s65_s24 }
   0x6   :  { %s3173_s27 = scalar_lea.hbm %s3970_s1, 192 }
   0x7   :  { %p3174_p0 = scmp.ne.s32.totalorder %s3970_s1, %s3173_s27  ;;  %p3177_p1 = scmp.lt.u32.totalorder %s3173_s27, %s3970_s1 }
   0x9   :  { %p3179_p2 = pnand %p3177_p1, %p3174_p0 }
   0xb   :  { %3182 = shalt.err (!%p3179_p2)
}
   0xc   :  { %s3183_s14 = scalar_lea.vmem %s41_s22, 192  ;;  %p3188_p4 = scmp.lt.s32.totalorder %s41_s22, %s41_s22 }
   0xd   :  { %p3184_p3 = scmp.ne.s32.totalorder %s41_s22, %s3183_s14  ;;  %p3189_p5 = scmp.lt.s32.totalorder %s3183_s14, %s3183_s14 }
   0xf   :  { %p3190_p6 = por %p3189_p5, %p3188_p4 }
  0x11   :  { %p3191_p7 = pnand %p3190_p6, %p3184_p3 }
  0x13   :  { %3194 = shalt.err (!%p3191_p7)
}
  0x14   :  { %43 = dma.hbm_to_vmem [thread:$0]  %s3970_s1, 192, %s41_s22, [#allocation7]  }
  0x15   :  { %s3195_s19 = scalar_lea.hbm %s3975_s6, 3072 }
  0x16   :  { %p3196_p8 = scmp.ne.s32.totalorder %s3975_s6, %s3195_s19  ;;  %p3199_p9 = scmp.lt.u32.totalorder %s3195_s19, %s3975_s6 }
  0x18   :  { %p3201_p10 = pnand %p3199_p9, %p3196_p8 }
  0x1a   :  { %3204 = shalt.err (!%p3201_p10)
}
  0x1b   :  { %s3205_s26 = scalar_lea.vmem %s3422_s24, 3072  ;;  %p3210_p12 = scmp.lt.s32.totalorder %s3422_s24, %s3422_s24 }
  0x1c   :  { %p3206_p11 = scmp.ne.s32.totalorder %s3422_s24, %s3205_s26  ;;  %p3211_p13 = scmp.lt.s32.totalorder %s3205_s26, %s3205_s26 }
  0x1e   :  { %p3212_p0 = por %p3211_p13, %p3210_p12 }
  0x20   :  { %p3213_p1 = pnand %p3212_p0, %p3206_p11 }
  0x22   :  { %3216 = shalt.err (!%p3213_p1)
}
  0x23   :  { %s3339_s1 = smov 192   ;;  %s3340_s22 = smov 12  }
  0x24   :  { %71 = dma.hbm_to_vmem [thread:$0]  %s3975_s6, 3072, %s3422_s24, [#allocation10], %s3339_s1, %s3339_s1, %s3340_s22  }
  0x25   :  { %s3341_s29 = smov [#allocation3]   ;;  %s3217_s15 = scalar_lea.hbm %s3969_s0, 512 }
  0x26   :  { %s27_s30 = sshll.u32 %s3341_s29, 4  ;;  %p3218_p2 = scmp.ne.s32.totalorder %s3969_s0, %s3217_s15  ;;  %s28_s30 = int_to_ptr.vmem [resolvable:$true] %s27_s30 }
  0x27   :  { %p3221_p3 = scmp.lt.u32.totalorder %s3217_s15, %s3969_s0 }
  0x29   :  { %p3223_p4 = pnand %p3221_p3, %p3218_p2 }
  0x2b   :  { %3226 = shalt.err (!%p3223_p4)
}
  0x2c   :  { %s3227_s20 = scalar_lea.vmem %s28_s30, 512  ;;  %p3232_p6 = scmp.lt.s32.totalorder %s28_s30, %s28_s30 }
  0x2d   :  { %p3228_p5 = scmp.ne.s32.totalorder %s28_s30, %s3227_s20  ;;  %p3233_p7 = scmp.lt.s32.totalorder %s3227_s20, %s3227_s20 }
  0x2f   :  { %p3234_p8 = por %p3233_p7, %p3232_p6 }
  0x31   :  { %p3235_p9 = pnand %p3234_p8, %p3228_p5 }
  0x33   :  { %3238 = shalt.err (!%p3235_p9)
}
  0x34   :  { %s3342_s6 = smov 128   ;;  %s3343_s24 = smov 8  }
  0x35   :  { %33 = dma.hbm_to_vmem [thread:$0]  %s3969_s0, 512, %s28_s30, [#allocation4], %s3342_s6, %s3342_s6, %s3343_s24  }
  0x36   :  { %s3344_s25 = smov [#allocation8]   ;;  %s3345_s1 = smov [#allocation11]  }
  0x37   :  { %s50_s26 = sshll.u32 %s3344_s25, 4  ;;  %s79_s22 = sshll.u32 %s3345_s1, 4  ;;  %s51_s26 = int_to_ptr.vmem [resolvable:$true] %s50_s26  ;;  %s80_s22 = int_to_ptr.vmem [resolvable:$true] %s79_s22 }
  0x38   :  { %s3239_s29 = scalar_lea.hbm %s3971_s2, 16 }
  0x39   :  { %p3240_p10 = scmp.ne.s32.totalorder %s3971_s2, %s3239_s29  ;;  %p3243_p11 = scmp.lt.u32.totalorder %s3239_s29, %s3971_s2 }
  0x3b   :  { %p3245_p12 = pnand %p3243_p11, %p3240_p10 }
  0x3d   :  { %3248 = shalt.err (!%p3245_p12)
}
  0x3e   :  { %s3249_s0 = scalar_lea.vmem %s51_s26, 16  ;;  %s3253_s30 = scalar_lea.vmem %s51_s26, 32 }
  0x3f   :  { %p3250_p13 = scmp.ne.s32.totalorder %s51_s26, %s3249_s0  ;;  %p3254_p0 = scmp.lt.s32.totalorder %s51_s26, %s51_s26 }
  0x40   :  { %p3255_p1 = scmp.lt.s32.totalorder %s3253_s30, %s3249_s0 }
  0x42   :  { %p3256_p2 = por %p3255_p1, %p3254_p0 }
  0x44   :  { %p3257_p3 = pnand %p3256_p2, %p3250_p13 }
  0x46   :  { %3260 = shalt.err (!%p3257_p3)
}
  0x47   :  { %53 = dma.hbm_to_vmem [thread:$0]  %s3971_s2, 16, %s51_s26, [#allocation7]  }
  0x48   :  { %s3261_s21 = scalar_lea.hbm %s3977_s8, 4096 }
  0x49   :  { %p3262_p4 = scmp.ne.s32.totalorder %s3977_s8, %s3261_s21  ;;  %p3265_p5 = scmp.lt.u32.totalorder %s3261_s21, %s3977_s8 }
  0x4b   :  { %p3267_p6 = pnand %p3265_p5, %p3262_p4 }
  0x4d   :  { %3270 = shalt.err (!%p3267_p6)
}
  0x4e   :  { %s3271_s28 = scalar_lea.vmem %s80_s22, 4096  ;;  %p3276_p8 = scmp.lt.s32.totalorder %s80_s22, %s80_s22 }
  0x4f   :  { %p3272_p7 = scmp.ne.s32.totalorder %s80_s22, %s3271_s28  ;;  %p3277_p9 = scmp.lt.s32.totalorder %s3271_s28, %s3271_s28 }
  0x51   :  { %p3278_p10 = por %p3277_p9, %p3276_p8 }
  0x53   :  { %p3279_p11 = pnand %p3278_p10, %p3272_p7 }
  0x55   :  { %3282 = shalt.err (!%p3279_p11)
}
  0x56   :  { %s3346_s2 = smov 256   ;;  %s3347_s26 = smov 16  }
  0x57   :  { %85 = dma.hbm_to_vmem [thread:$0]  %s3977_s8, 4096, %s80_s22, [#allocation10], %s3346_s2, %s3346_s2, %s3347_s26  }
  0x58   :  { %s3348_s14 = smov [#allocation12]   ;;  %s3283_s30 = scalar_lea.hbm %s3979_s10, 4096 }
  0x59   :  { %s93_s15 = sshll.u32 %s3348_s14, 4  ;;  %p3284_p12 = scmp.ne.s32.totalorder %s3979_s10, %s3283_s30  ;;  %s94_s15 = int_to_ptr.vmem [resolvable:$true] %s93_s15 }
  0x5a   :  { %p3287_p13 = scmp.lt.u32.totalorder %s3283_s30, %s3979_s10 }
  0x5c   :  { %p3289_p0 = pnand %p3287_p13, %p3284_p12 }
  0x5e   :  { %3292 = shalt.err (!%p3289_p0)
}
  0x5f   :  { %s3293_s21 = scalar_lea.vmem %s94_s15, 4096  ;;  %p3298_p2 = scmp.lt.s32.totalorder %s94_s15, %s94_s15 }
  0x60   :  { %p3294_p1 = scmp.ne.s32.totalorder %s94_s15, %s3293_s21  ;;  %p3299_p3 = scmp.lt.s32.totalorder %s3293_s21, %s3293_s21 }
  0x62   :  { %p3300_p4 = por %p3299_p3, %p3298_p2 }
  0x64   :  { %p3301_p5 = pnand %p3300_p4, %p3294_p1 }
  0x66   :  { %3304 = shalt.err (!%p3301_p5)
}
  0x67   :  { %s3349_s8 = smov 64   ;;  %s3350_s22 = smov 4  }
  0x68   :  { %99 = dma.hbm_to_vmem [thread:$0]  %s3979_s10, 4096, %s94_s15, [#allocation13], %s3349_s8, %s3349_s8, %s3350_s22  }
  0x69   :  { %3327 = dma.done.wait [#allocation4], 512  }
  0x6a   :  { %3328 = vsyncadd [#allocation4], 4294966784 }
  0x6b   :  { %3329 = dma.done.wait [#allocation7], 208  }
  0x6c   :  { %3330 = vsyncadd [#allocation7], 4294967088 }
  0x6d   :  { %3331 = dma.done.wait [#allocation10], 7168  }
  0x6e   :  { %3332 = vsyncadd [#allocation10], 4294960128 }
  0x6f   :  { %3333 = dma.done.wait [#allocation13], 4096  }
  0x70   :  { %3334 = vsyncadd [#allocation13], 4294963200  ;;  %v186_v0 = vld [vmem:[#allocation3] sm:$0xff]  ;;  %v188_v1 = vld [vmem:[#allocation3 + $0x10] sm:$0xff]  ;;  %v3351_v43 = vmov 0   ;;  %v123_v50 = vlaneseq  ;;  %vm3353_vm0 = vmmov 0  }
  0x71   :  { %v187_v2 = vld [vmem:[#allocation3 + $0x8] sm:$0xff]  ;;  %192 = vadd.xlane.f32.xlu0 %v186_v0  ;;  %196 = vadd.xlane.f32.xlu1 %v188_v1  ;;  %v189_v3 = vld [vmem:[#allocation3 + $0x18] sm:$0xff]  ;;  %vm551_vm1 = vcmask 261120   ;;  %s3355_s28 = smov 32   ;;  %vm601_vm2 = vcmask 130048   ;;  %vm1090_vm3 = vcmask 523264  }
  0x72   :  { %v2911_v4 = vld [vmem:[#allocation9 + $0x4] ss:$12 sps:$4 sm:$0xff]   ;;  %v2913_v21 = vld [vmem:[#allocation9] ss:$12 sps:$4 sm:$0xff]   ;;  %v2914_v22 = vld [vmem:[#allocation9 + $0x1c] ss:$12 sps:$4 sm:$0xff]   ;;  %478 = vmatprep.mubr.bf16.mxu0 %v3351_v43 }
  0x73   :  { %446 = vmatprep.subr.bf16.mxu0 %v2911_v4  ;;  %v2916_v23 = vld [vmem:[#allocation9 + $0x8] ss:$12 sps:$4 sm:$0xff]   ;;  %v2917_v24 = vld [vmem:[#allocation9 + $0x18] ss:$12 sps:$4 sm:$0xff]   ;;  %v2920_v26 = vld [vmem:[#allocation9 + $0x20] ss:$12 sps:$4 sm:$0xff]  }
  0x74   :  { %447 = vmatpush1.bf16.msra.mxu0 %v2913_v21  ;;  %2775 = vmatprep.subr.bf16.mxu1 %v2916_v23  ;;  %v2918_v25 = vld [vmem:[#allocation9 + $0x34] ss:$12 sps:$4 sm:$0xff]   ;;  %v2921_v27 = vld [vmem:[#allocation9 + $0x30] ss:$12 sps:$4 sm:$0xff]   ;;  %v2922_v28 = vld [vmem:[#allocation9 + $0x4c] ss:$12 sps:$4 sm:$0xff]  }
  0x75   :  { %194 = vadd.xlane.f32.xlu0 %v187_v2  ;;  %198 = vadd.xlane.f32.xlu1 %v189_v3  ;;  %v2924_v29 = vld [vmem:[#allocation9 + $0x38] ss:$12 sps:$4 sm:$0xff]   ;;  %v2925_v30 = vld [vmem:[#allocation9 + $0x48] ss:$12 sps:$4 sm:$0xff]   ;;  %v2928_v32 = vld [vmem:[#allocation9 + $0x50] ss:$12 sps:$4 sm:$0xff]  }
  0x76   :  { %448 = vmatprep.subr.bf16.mxu0 %v2914_v22  ;;  %2776 = vmatpush3.bf16.msra.mxu1 %v2916_v23  ;;  %v2926_v31 = vld [vmem:[#allocation9 + $0x64] ss:$12 sps:$4 sm:$0xff]   ;;  %v2929_v33 = vld [vmem:[#allocation9 + $0x60] ss:$12 sps:$4 sm:$0xff]   ;;  %v2930_v34 = vld [vmem:[#allocation9 + $0x7c] ss:$12 sps:$4 sm:$0xff]  }
  0x77   :  { %2777 = vmatprep.subr.bf16.mxu1 %v2920_v26  ;;  %v2932_v35 = vld [vmem:[#allocation9 + $0x68] ss:$12 sps:$4 sm:$0xff]   ;;  %v2933_v36 = vld [vmem:[#allocation9 + $0x78] ss:$12 sps:$4 sm:$0xff]   ;;  %v2936_v38 = vld [vmem:[#allocation9 + $0x80] ss:$12 sps:$4 sm:$0xff]  }
  0x78   :  { %449 = vmatpush1.bf16.msra.mxu0 %v2917_v24  ;;  %v2934_v37 = vld [vmem:[#allocation9 + $0x94] ss:$12 sps:$4 sm:$0xff]   ;;  %v2937_v39 = vld [vmem:[#allocation9 + $0x90] ss:$12 sps:$4 sm:$0xff]   ;;  %v2938_v40 = vld [vmem:[#allocation9 + $0xac] ss:$12 sps:$4 sm:$0xff]  }
  0x79   :  { %450 = vmatprep.subr.bf16.mxu0 %v2918_v25  ;;  %v2940_v41 = vld [vmem:[#allocation9 + $0x98] ss:$12 sps:$4 sm:$0xff]   ;;  %v2941_v42 = vld [vmem:[#allocation9 + $0xa8] ss:$12 sps:$4 sm:$0xff]   ;;  %v2942_v44 = vld [vmem:[#allocation9 + $0xb0] ss:$12 sps:$4 sm:$0xff]  }
  0x7a   :  { %2778 = vmatpush3.bf16.msra.mxu1 %v2920_v26  ;;  %v3523_v56 = vshrl.u32 %v123_v50, 7  ;;  %v121_v60 = vld [vmem:[#allocation6] ss:$2 sm:$0x3f]  ;;  %v2552_v62 = vld [vmem:[#allocation8] ss:$0 sm:$0xff] }
  0x7b   :  { %2779 = vmatprep.subr.bf16.mxu1 %v2924_v29  ;;  %vm1093_vm4 = vcmask 785408  }
  0x7c   :  { %451 = vmatpush1.bf16.msra.mxu0 %v2921_v27  ;;  %v141_v59 = vsub.s32 4, %v3523_v56 }
  0x7d   :  { %452 = vmatprep.subr.bf16.mxu0 %v2922_v28 }
  0x7e   :  { %2780 = vmatpush3.bf16.msra.mxu1 %v2924_v29 }
  0x7f   :  { %2781 = vmatprep.subr.bf16.mxu1 %v2928_v32 }
  0x80   :  { %453 = vmatpush1.bf16.msra.mxu0 %v2925_v30 }
  0x81   :  { %454 = vmatprep.subr.bf16.mxu0 %v2926_v31 }
  0x82   :  { %2782 = vmatpush3.bf16.msra.mxu1 %v2928_v32 }
  0x83   :  { %2783 = vmatprep.subr.bf16.mxu1 %v2932_v35 }
  0x84   :  { %455 = vmatpush1.bf16.msra.mxu0 %v2929_v33  ;;  %v3352_v33 = vmov 0.0  }
  0x85   :  { %456 = vmatprep.subr.bf16.mxu0 %v2930_v34  ;;  %v3546_v34 = vsub.s32 0, %v3523_v56 }
  0x86   :  { %2784 = vmatpush3.bf16.msra.mxu1 %v2932_v35  ;;  %v301_v35 = vld [vmem:[%s3976_s7] sm:$0x7]  ;;  %s3354_s7 = smov 96  }
  0x87   :  { %2785 = vmatprep.subr.bf16.mxu1 %v2936_v38 }
  0x88   :  { %457 = vmatpush1.bf16.msra.mxu0 %v2933_v36  ;;  %v3552_v36 = vsub.s32 1, %v3523_v56 }
  0x89   :  { %458 = vmatprep.subr.bf16.mxu0 %v2934_v37  ;;  %v306_v37 = vrot.slane %v301_v35, %v3546_v34 }
  0x8a   :  { %2786 = vmatpush3.bf16.msra.mxu1 %v2936_v38 }
  0x8b   :  { %2787 = vmatprep.subr.bf16.mxu1 %v2940_v41 }
  0x8c   :  { %459 = vmatpush1.bf16.msra.mxu0 %v2937_v39  ;;  %v310_v39 = vrot.slane %v301_v35, %v3552_v36 }
  0x8d   :  { %460 = vmatprep.subr.bf16.mxu0 %v2938_v40 }
  0x8e   :  { %2788 = vmatpush3.bf16.msra.mxu1 %v2940_v41 }
  0x8f   :  { %2789 = vmatprep.subr.bf16.mxu1 %v2942_v44 }
  0x90   :  { %461 = vmatpush1.bf16.msra.mxu0 %v2941_v42 }
  0x91   :  { %2801 = vmatprep.subr.bf16.mxu0 %v3352_v33 }
  0x92   :  { %2790 = vmatpush3.bf16.msra.mxu1 %v2942_v44 }
  0x93   :  { %2795 = vmatprep.subr.bf16.mxu1 %v3352_v33 }
  0xfe   :  { %v193_v5 = vpop.xlane.xlu0 %192  ;;  %v197_v6 = vpop.xlane.xlu1 %196 }
  0xff   :  { %v201_v7 = vmul.f32 0.0078125, %v193_v5  ;;  %v203_v8 = vmul.f32 0.0078125, %v197_v6  ;;  %v3531_v5 = vsub.s32 2, %v3523_v56 }
 0x101   :  { %v3506_v9 = vsub.f32 %v186_v0, %v201_v7  ;;  %v3508_v10 = vsub.f32 %v188_v1, %v203_v8  ;;  %v142_v0 = vrot.slane %v121_v60, %v141_v59  ;;  %v2553_v1 = vld [vmem:[%s3972_s3] ss:$0 sm:$0xff]  ;;  %v314_v41 = vrot.slane %v301_v35, %v3531_v5 }
 0x102   :  { %v195_v11 = vpop.xlane.xlu0 %194  ;;  %v199_v12 = vpop.xlane.xlu1 %198 }
 0x103   :  { %v202_v13 = vmul.f32 0.0078125, %v195_v11  ;;  %v209_v14 = vmul.f32 %v3506_v9, %v3506_v9  ;;  %v204_v15 = vmul.f32 0.0078125, %v199_v12  ;;  %v211_v18 = vmul.f32 %v3508_v10, %v3508_v10 }
 0x104   :  { %v257_v11 = vadd.f32 1.0, %v142_v0 }
 0x105   :  { %v3512_v16 = vsub.f32 %v187_v2, %v202_v13  ;;  %213 = vadd.xlane.f32.xlu0 %v209_v14  ;;  %v3514_v17 = vsub.f32 %v189_v3, %v204_v15  ;;  %v154_v2 = vld [vmem:[#allocation6 + $0x1] ss:$2 sm:$0x3f]  ;;  %v134_v15 = vrot.slane %v121_v60, %v3531_v5 }
 0x106   :  { %v175_v12 = vrot.slane %v154_v2, %v141_v59 }
 0x107   :  { %v210_v19 = vmul.f32 %v3512_v16, %v3512_v16  ;;  %v212_v20 = vmul.f32 %v3514_v17, %v3514_v17 }
 0x108   :  { %v258_v22 = vadd.f32 1.0, %v175_v12 }
 0x109   :  { %217 = vadd.xlane.f32.xlu0 %v211_v18  ;;  %215 = vadd.xlane.f32.xlu1 %v210_v19 }
 0x10d   :  { %219 = vadd.xlane.f32.xlu1 %v212_v20 }
 0x192   :  { %v214_v45 = vpop.xlane.xlu0 %213 }
 0x193   :  { %v221_v46 = vmul.f32 0.0078125, %v214_v45 }
 0x195   :  { %v225_v47 = vadd.f32 1e-06, %v221_v46 }
 0x196   :  { %v216_v48 = vpop.xlane.xlu1 %215  ;;  %v218_v49 = vpop.xlane.xlu0 %217 }
 0x197   :  { %3023 = vrsqrt.f32 %v225_v47  ;;  %v222_v51 = vmul.f32 0.0078125, %v216_v48  ;;  %v223_v52 = vmul.f32 0.0078125, %v218_v49 }
 0x199   :  { %v226_v53 = vadd.f32 1e-06, %v222_v51  ;;  %v227_v54 = vadd.f32 1e-06, %v223_v52 }
 0x19a   :  { %v220_v55 = vpop.xlane.xlu1 %219 }
 0x19b   :  { %3025 = vrsqrt.f32 %v226_v53  ;;  %v224_v57 = vmul.f32 0.0078125, %v220_v55 }
 0x19c   :  { %3027 = vrsqrt.f32 %v227_v54 }
 0x19d   :  { %v228_v58 = vadd.f32 1e-06, %v224_v57 }
 0x19f   :  { %3029 = vrsqrt.f32 %v228_v58 }
 0x1a1   :  { %v3024_v61 = vpop.eup %3023 }
 0x1a2   :  { %v233_v63 = vmul.f32 %v3024_v61, %v3506_v9 }
 0x1a4   :  { %v243_v3 = vmul.f32 %v2552_v62, %v233_v63 }
 0x1a5   :  { %v3026_v4 = vpop.eup %3025 }
 0x1a6   :  { %v3028_v6 = vpop.eup %3027  ;;  %v234_v7 = vmul.f32 %v3026_v4, %v3512_v16  ;;  %v253_v8 = vadd.f32 %v2553_v1, %v243_v3  ;;  %v167_v16 = vrot.slane %v154_v2, %v3531_v5 }
 0x1a7   :  { %v235_v13 = vmul.f32 %v3028_v6, %v3508_v10 }
 0x1a8   :  { %v244_v9 = vmul.f32 %v2552_v62, %v234_v7  ;;  %v259_v21 = vmul.f32 %v257_v11, %v253_v8 }
 0x1a9   :  { %v3030_v14 = vpop.eup %3029  ;;  %v245_v18 = vmul.f32 %v2552_v62, %v235_v13 }
 0x1aa   :  { %v236_v19 = vmul.f32 %v3030_v14, %v3514_v17  ;;  %v254_v20 = vadd.f32 %v2553_v1, %v244_v9  ;;  %v263_v26 = vadd.f32 %v259_v21, %v134_v15 }
 0x1ab   :  { %v255_v23 = vadd.f32 %v2553_v1, %v245_v18 }
 0x1ac   :  { %v260_v24 = vmul.f32 %v257_v11, %v254_v20  ;;  %v246_v25 = vmul.f32 %v2552_v62, %v236_v19 }
 0x1ad   :  { %v261_v29 = vmul.f32 %v258_v22, %v255_v23 }
 0x1ae   :  { %v264_v27 = vadd.f32 %v260_v24, %v134_v15  ;;  %v256_v28 = vadd.f32 %v2553_v1, %v246_v25 }
 0x1af   :  { %v265_v31 = vadd.f32 %v261_v29, %v167_v16 }
 0x1b0   :  { %v267_v10 = vpack.c.bf16 %v264_v27, %v263_v26  ;;  %v262_v30 = vmul.f32 %v258_v22, %v256_v28 }
 0x1b2   :  { %479 = vmatmul.mubr.bf16.vlgmr.msra.gmra.mrb[0].mxu0 %v267_v10  ;;  %2791 = vmatprep.mubr.bf16.mxu1 %v267_v10  ;;  %v266_v32 = vadd.f32 %v262_v30, %v167_v16 }
 0x1b3   :  { %488 = vmatprep.mubr.bf16.mxu0 %v3351_v43 }
 0x1b4   :  { %v268_v17 = vpack.c.bf16 %v266_v32, %v265_v31 }
 0x1b6   :  { %2792 = vmatmul.mubr.bf16.vlgmr.msra.gmra.mrb[0].mxu1 %v268_v17 }
 0x1b7   :  { %2797 = vmatprep.mubr.msk.bf16.mxu1 %vm3353_vm0, %v3352_v33 }
 0x1ba   :  { %489 = vmatmul.mubr.bf16.gmra.mrb[4].mxu0 %v268_v17 }
 0x1bb   :  { %2803 = vmatprep.mubr.msk.bf16.mxu0 %vm3353_vm0, %v3352_v33 }
 0x285   :  { %v480_v38 = vpop.f32.mrb[0].mxu0 }
 0x286   :  { %v482_v40 = vpop.f32.mrb[1].mxu0  ;;  %v481_v44 = vadd.f32 %v480_v38, %v306_v37 }
 0x287   :  { %v484_v42 = vpop.f32.mrb[2].mxu0  ;;  %v483_v47 = vadd.f32 %v482_v40, %v310_v39 }
 0x288   :  { %v485_v45 = vadd.f32 %v484_v42, %v306_v37  ;;  %v486_v46 = vpop.f32.mrb[3].mxu0 }
 0x289   :  { %v487_v48 = vadd.f32 %v486_v46, %v310_v39  ;;  %v2793_v49 = vpop.f32.mrb[0].mxu1 }
 0x28a   :  { %v548_v50 = vpack.c.bf16 %v485_v45, %v481_v44  ;;  %v542_v51 = vadd.f32 %v2793_v49, %v314_v41  ;;  %v533_v52 = vpop.f32.mrb[1].mxu1 }
 0x28b   :  { %v549_v53 = vpack.c.bf16 %v487_v48, %v483_v47  ;;  %v2794_v54 = vpop.f32.mrb[2].mxu1  ;;  %v534_v58 = vadd.f32 %v533_v52, %v314_v41 }
 0x28c   :  { %v545_v55 = vadd.f32 %v2794_v54, %v314_v41  ;;  %v536_v57 = vpop.f32.mrb[3].mxu1  ;;  %672 = vrot.lane.b32.xlu1 %v548_v50, %s3354_s7 }
 0x28d   :  { %v537_v59 = vadd.f32 %v536_v57, %v314_v41  ;;  %v490_v60 = vpop.f32.mrb[4].mxu0  ;;  %675 = vrot.lane.b32.xlu0 %v549_v53, %s3354_s7  ;;  %v556_v61 = vsel %vm551_vm1, %v549_v53, 0 }
 0x28e   :  { %v3560_v62 = vpack.c.bf16 %v545_v55, %v542_v51  ;;  %v492_v63 = vpop.f32.mrb[5].mxu0  ;;  %2796 = vmatpush3.bf16.xpose.msra.mxu1 %v556_v61  ;;  %v491_v2 = vadd.f32 %v490_v60, %v306_v37 }
 0x28f   :  { %v3562_v0 = vpack.c.bf16 %v537_v59, %v534_v58  ;;  %v494_v1 = vpop.f32.mrb[6].mxu0  ;;  %2807 = vmatprep.subr.bf16.mxu1 %v3352_v33  ;;  %v493_v6 = vadd.f32 %v492_v63, %v310_v39 }
 0x290   :  { %v495_v3 = vadd.f32 %v494_v1, %v306_v37  ;;  %v496_v4 = vpop.f32.mrb[7].mxu0  ;;  %801 = vrot.lane.b32.xlu1 %v549_v53, %s3349_s8 }
 0x291   :  { %v497_v7 = vadd.f32 %v496_v4, %v310_v39  ;;  %2802 = vmatpush3.bf16.msra.mxu0 %v3562_v0  ;;  %926 = vrot.lane.b32.xlu0 %v549_v53, %s3355_s28 }
 0x292   :  { %v1096_v8 = vpack.c.bf16 %v495_v3, %v491_v2  ;;  %2813 = vmatprep.subr.bf16.mxu0 %v3352_v33 }
 0x293   :  { %v1097_v11 = vpack.c.bf16 %v497_v7, %v493_v6 }
 0x294   :  { %799 = vrot.lane.b32.xlu1 %v548_v50, %s3349_s8 }
 0x295   :  { %1221 = vrot.lane.b32.xlu0 %v1097_v11, %s3354_s7  ;;  %2798 = vmatmul.mubr.msk.bf16.vlgmr.msra.gmra.mrb[4].mxu1 %vm551_vm1, %v548_v50  ;;  %v1103_v22 = vsel %vm551_vm1, %v1097_v11, 0 }
 0x296   :  { %2809 = vmatprep.mubr.msk.bf16.mxu1 %vm3353_vm0, %v3352_v33 }
 0x298   :  { %924 = vrot.lane.b32.xlu1 %v548_v50, %s3355_s28 }
 0x299   :  { %1347 = vrot.lane.b32.xlu0 %v1097_v11, %s3349_s8 }
 0x29c   :  { %1218 = vrot.lane.b32.xlu1 %v1096_v8, %s3354_s7 }
 0x29d   :  { %1472 = vrot.lane.b32.xlu0 %v1097_v11, %s3355_s28 }
 0x2a0   :  { %1345 = vrot.lane.b32.xlu1 %v1096_v8, %s3349_s8 }
 0x2a4   :  { %1470 = vrot.lane.b32.xlu1 %v1096_v8, %s3355_s28 }
 0x2fe   :  { %v673_v12 = vpop.permute.xlu1 %672 }
 0x2ff   :  { %v676_v13 = vpop.permute.xlu0 %675 }
 0x300   :  { %v681_v9 = vsel %vm551_vm1, %v676_v13, 0 }
 0x301   :  { %2808 = vmatpush3.bf16.xpose.msra.mxu1 %v681_v9 }
 0x302   :  { %2819 = vmatprep.subr.bf16.mxu1 %v3352_v33  ;;  %v802_v14 = vpop.permute.xlu1 %801 }
 0x303   :  { %v807_v15 = vsel %vm551_vm1, %v802_v14, 0  ;;  %v927_v18 = vpop.permute.xlu0 %926 }
 0x304   :  { %v932_v20 = vsel %vm551_vm1, %v927_v18, 0 }
 0x306   :  { %v800_v19 = vpop.permute.xlu1 %799 }
 0x307   :  { %v1222_v23 = vpop.permute.xlu0 %1221 }
 0x308   :  { %2810 = vmatmul.mubr.msk.bf16.vlgmr.msra.gmra.mrb[8].mxu1 %vm551_vm1, %v673_v12  ;;  %v1227_v24 = vsel %vm551_vm1, %v1222_v23, 0 }
 0x309   :  { %2820 = vmatpush3.bf16.xpose.msra.mxu1 %v807_v15  ;;  %2821 = vmatprep.mubr.msk.bf16.mxu1 %vm3353_vm0, %v3352_v33 }
 0x30a   :  { %2831 = vmatprep.subr.bf16.mxu1 %v3352_v33  ;;  %v925_v21 = vpop.permute.xlu1 %924 }
 0x30b   :  { %v1348_v25 = vpop.permute.xlu0 %1347 }
 0x30c   :  { %v1353_v26 = vsel %vm551_vm1, %v1348_v25, 0 }
 0x30e   :  { %v1219_v16 = vpop.permute.xlu1 %1218 }
 0x30f   :  { %v1473_v27 = vpop.permute.xlu0 %1472 }
 0x310   :  { %2822 = vmatmul.mubr.msk.bf16.vlgmr.msra.gmra.mrb[12].mxu1 %vm551_vm1, %v800_v19  ;;  %v1478_v29 = vsel %vm551_vm1, %v1473_v27, 0 }
 0x311   :  { %2832 = vmatpush3.bf16.xpose.msra.mxu1 %v932_v20  ;;  %2833 = vmatprep.mubr.msk.bf16.mxu1 %vm3353_vm0, %v3352_v33 }
 0x312   :  { %2843 = vmatprep.subr.bf16.mxu1 %v3352_v33  ;;  %v1346_v28 = vpop.permute.xlu1 %1345 }
 0x316   :  { %v1471_v10 = vpop.permute.xlu1 %1470 }
 0x318   :  { %2834 = vmatmul.mubr.msk.bf16.vlgmr.msra.gmra.mrb[16].mxu1 %vm551_vm1, %v925_v21 }
 0x319   :  { %2844 = vmatpush3.bf16.xpose.msra.mxu1 %v1103_v22  ;;  %2845 = vmatprep.mubr.msk.bf16.mxu1 %vm3353_vm0, %v3352_v33 }
 0x31a   :  { %2855 = vmatprep.subr.bf16.mxu1 %v3352_v33 }
 0x320   :  { %2846 = vmatmul.mubr.msk.bf16.vlgmr.msra.gmra.mrb[20].mxu1 %vm551_vm1, %v1096_v8 }
 0x321   :  { %2856 = vmatpush3.bf16.xpose.msra.mxu1 %v1227_v24  ;;  %2857 = vmatprep.mubr.msk.bf16.mxu1 %vm3353_vm0, %v3352_v33 }
 0x322   :  { %2867 = vmatprep.subr.bf16.mxu1 %v3352_v33 }
 0x328   :  { %2858 = vmatmul.mubr.msk.bf16.vlgmr.msra.gmra.mrb[24].mxu1 %vm551_vm1, %v1219_v16 }
 0x329   :  { %2868 = vmatpush3.bf16.xpose.msra.mxu1 %v1353_v26  ;;  %2869 = vmatprep.mubr.msk.bf16.mxu1 %vm3353_vm0, %v3352_v33 }
 0x32a   :  { %2879 = vmatprep.subr.bf16.mxu1 %v3352_v33 }
 0x330   :  { %2870 = vmatmul.mubr.msk.bf16.vlgmr.msra.gmra.mrb[28].mxu1 %vm551_vm1, %v1346_v28 }
 0x331   :  { %2880 = vmatpush3.bf16.xpose.msra.mxu1 %v1478_v29  ;;  %2881 = vmatprep.mubr.msk.bf16.mxu1 %vm3353_vm0, %v3352_v33 }
 0x338   :  { %2882 = vmatmul.mubr.msk.bf16.vlgmr.msra.gmra.mrb[32].mxu1 %vm551_vm1, %v1471_v10 }
 0x339   :  { %1965 = vmatprep.mubr.bf16.mxu1 %v3351_v43 }
 0x368   :  { %v592_v30 = vpop.f32.mrb[4].mxu1 }
 0x369   :  { %v599_v31 = vmul.f32 0.17677669, %v592_v30  ;;  %v2799_v32 = vpop.f32.mrb[5].mxu1 }
 0x36a   :  { %v595_v17 = vpop.f32.mrb[6].mxu1 }
 0x36b   :  { %v600_v35 = vmul.f32 0.17677669, %v595_v17  ;;  %v2800_v37 = vpop.f32.mrb[7].mxu1  ;;  %v602_v38 = vsel %vm601_vm2, %v599_v31, -inf }
 0x36c   :  { %603 = vmax.xlane.f32.xlu0 %v602_v38 }
 0x36d   :  { %v605_v39 = vsel %vm601_vm2, %v600_v35, -inf }
 0x36e   :  { %606 = vmax.xlane.f32.xlu1 %v605_v39 }
 0x3db   :  { %v717_v40 = vpop.f32.mrb[8].mxu1 }
 0x3dc   :  { %v3615_v41 = vmul.f32 0.17677669, %v717_v40  ;;  %v2811_v42 = vpop.f32.mrb[9].mxu1 }
 0x3dd   :  { %v720_v44 = vpop.f32.mrb[10].mxu1 }
 0x3de   :  { %v3617_v45 = vmul.f32 0.17677669, %v720_v44  ;;  %v2812_v46 = vpop.f32.mrb[11].mxu1  ;;  %v726_v47 = vsel %vm601_vm2, %v3615_v41, -inf }
 0x3df   :  { %727 = vmax.xlane.f32.xlu0 %v726_v47 }
 0x3e0   :  { %v729_v48 = vsel %vm601_vm2, %v3617_v45, -inf }
 0x3e3   :  { %730 = vmax.xlane.f32.xlu0 %v729_v48  ;;  %v843_v49 = vpop.f32.mrb[12].mxu1 }
 0x3e4   :  { %v3623_v50 = vmul.f32 0.17677669, %v843_v49  ;;  %v2823_v51 = vpop.f32.mrb[13].mxu1 }
 0x3e5   :  { %v846_v52 = vpop.f32.mrb[14].mxu1 }
 0x3e6   :  { %v3625_v53 = vmul.f32 0.17677669, %v846_v52  ;;  %v2824_v54 = vpop.f32.mrb[15].mxu1  ;;  %v852_v55 = vsel %vm601_vm2, %v3623_v50, -inf }
 0x3e7   :  { %853 = vmax.xlane.f32.xlu0 %v852_v55 }
 0x3e8   :  { %v855_v57 = vsel %vm601_vm2, %v3625_v53, -inf }
 0x3e9   :  { %856 = vmax.xlane.f32.xlu1 %v855_v57 }
 0x3eb   :  { %v968_v58 = vpop.f32.mrb[16].mxu1 }
 0x3ec   :  { %v3631_v59 = vmul.f32 0.17677669, %v968_v58  ;;  %v2835_v60 = vpop.f32.mrb[17].mxu1 }
 0x3ed   :  { %v971_v61 = vpop.f32.mrb[18].mxu1 }
 0x3ee   :  { %v3633_v63 = vmul.f32 0.17677669, %v971_v61  ;;  %v2836_v1 = vpop.f32.mrb[19].mxu1  ;;  %v977_v2 = vsel %vm601_vm2, %v3631_v59, -inf }
 0x3ef   :  { %978 = vmax.xlane.f32.xlu0 %v977_v2 }
 0x3f0   :  { %v980_v3 = vsel %vm601_vm2, %v3633_v63, -inf }
 0x3f1   :  { %981 = vmax.xlane.f32.xlu1 %v980_v3 }
 0x3f3   :  { %v1139_v4 = vpop.f32.mrb[20].mxu1 }
 0x3f4   :  { %v3639_v6 = vmul.f32 0.17677669, %v1139_v4  ;;  %v2847_v7 = vpop.f32.mrb[21].mxu1 }
 0x3f5   :  { %v1142_v8 = vpop.f32.mrb[22].mxu1 }
 0x3f6   :  { %v3641_v11 = vmul.f32 0.17677669, %v1142_v8  ;;  %v2848_v12 = vpop.f32.mrb[23].mxu1  ;;  %v1148_v13 = vsel %vm601_vm2, %v3639_v6, -inf }
 0x3f7   :  { %1149 = vmax.xlane.f32.xlu0 %v1148_v13 }
 0x3f8   :  { %v1151_v9 = vsel %vm601_vm2, %v3641_v11, -inf }
 0x3f9   :  { %v604_v14 = vpop.xlane.xlu0 %603  ;;  %1152 = vmax.xlane.f32.xlu1 %v1151_v9 }
 0x3fa   :  { %v608_v15 = vsub.f32 %v599_v31, %v604_v14 }
 0x3fb   :  { %v607_v18 = vpop.xlane.xlu1 %606  ;;  %v1263_v19 = vpop.f32.mrb[24].mxu1 }
 0x3fc   :  { %v610_v20 = vmul.f32 1.442695, %v608_v15  ;;  %v609_v21 = vsub.f32 %v600_v35, %v607_v18  ;;  %v3647_v22 = vmul.f32 0.17677669, %v1263_v19  ;;  %v2859_v23 = vpop.f32.mrb[25].mxu1 }
 0x3fd   :  { %v1266_v24 = vpop.f32.mrb[26].mxu1 }
 0x3fe   :  { %3031 = vpow2.f32 %v610_v20  ;;  %v612_v25 = vmul.f32 1.442695, %v609_v21  ;;  %v3649_v16 = vmul.f32 0.17677669, %v1266_v24  ;;  %v2860_v26 = vpop.f32.mrb[27].mxu1  ;;  %v1272_v27 = vsel %vm601_vm2, %v3647_v22, -inf }
 0x3ff   :  { %1273 = vmax.xlane.f32.xlu0 %v1272_v27 }
 0x400   :  { %3033 = vpow2.f32 %v612_v25  ;;  %v1275_v28 = vsel %vm601_vm2, %v3649_v16, -inf }
 0x401   :  { %1276 = vmax.xlane.f32.xlu1 %v1275_v28 }
 0x403   :  { %v1389_v29 = vpop.f32.mrb[28].mxu1 }
 0x404   :  { %v3655_v10 = vmul.f32 0.17677669, %v1389_v29  ;;  %v2871_v30 = vpop.f32.mrb[29].mxu1 }
 0x405   :  { %v1392_v31 = vpop.f32.mrb[30].mxu1 }
 0x406   :  { %v3657_v32 = vmul.f32 0.17677669, %v1392_v31  ;;  %v2872_v17 = vpop.f32.mrb[31].mxu1  ;;  %v1398_v35 = vsel %vm601_vm2, %v3655_v10, -inf }
 0x407   :  { %1399 = vmax.xlane.f32.xlu0 %v1398_v35 }
 0x408   :  { %v3661_v37 = vpop.eup %3031  ;;  %v1401_v38 = vsel %vm601_vm2, %v3657_v32, -inf }
 0x409   :  { %1402 = vmax.xlane.f32.xlu1 %v1401_v38  ;;  %v614_v39 = vsel %vm601_vm2, %v3661_v37, 0.0 }
 0x40a   :  { %v3667_v40 = vpop.eup %3033 }
 0x40b   :  { %615 = vadd.xlane.f32.xlu0 %v614_v39  ;;  %v1514_v42 = vpop.f32.mrb[32].mxu1  ;;  %v617_v44 = vsel %vm601_vm2, %v3667_v40, 0.0 }
 0x40c   :  { %v3671_v46 = vmul.f32 0.17677669, %v1514_v42  ;;  %v2883_v47 = vpop.f32.mrb[33].mxu1 }
 0x40d   :  { %618 = vadd.xlane.f32.xlu1 %v617_v44  ;;  %v1517_v48 = vpop.f32.mrb[34].mxu1 }
 0x40e   :  { %v3673_v49 = vmul.f32 0.17677669, %v1517_v48  ;;  %v2884_v51 = vpop.f32.mrb[35].mxu1  ;;  %v1523_v52 = vsel %vm601_vm2, %v3671_v46, -inf }
 0x40f   :  { %1524 = vmax.xlane.f32.xlu0 %v1523_v52 }
 0x410   :  { %v1526_v54 = vsel %vm601_vm2, %v3673_v49, -inf }
 0x411   :  { %1527 = vmax.xlane.f32.xlu1 %v1526_v54 }
 0x422   :  { %875 = vrot.lane.b32.xlu1 %v3562_v0, %s3349_s8 }
 0x425   :  { %750 = vrot.lane.b32.xlu0 %v3562_v0, %s3354_s7 }
 0x46c   :  { %v728_v55 = vpop.xlane.xlu0 %727 }
 0x46d   :  { %v732_v57 = vsub.f32 %v3615_v41, %v728_v55 }
 0x46f   :  { %v734_v58 = vmul.f32 1.442695, %v732_v57 }
 0x470   :  { %v731_v60 = vpop.xlane.xlu0 %730 }
 0x471   :  { %3035 = vpow2.f32 %v734_v58  ;;  %v733_v61 = vsub.f32 %v3617_v45, %v731_v60 }
 0x473   :  { %v736_v1 = vmul.f32 1.442695, %v733_v61 }
 0x474   :  { %v854_v2 = vpop.xlane.xlu0 %853 }
 0x475   :  { %3037 = vpow2.f32 %v736_v1  ;;  %v858_v3 = vsub.f32 %v3623_v50, %v854_v2 }
 0x476   :  { %v857_v4 = vpop.xlane.xlu1 %856 }
 0x477   :  { %v860_v7 = vmul.f32 1.442695, %v858_v3  ;;  %v859_v8 = vsub.f32 %v3625_v53, %v857_v4 }
 0x479   :  { %3039 = vpow2.f32 %v860_v7  ;;  %v862_v12 = vmul.f32 1.442695, %v859_v8 }
 0x47b   :  { %v3687_v13 = vpop.eup %3035  ;;  %3041 = vpow2.f32 %v862_v12 }
 0x47c   :  { %v979_v41 = vpop.xlane.xlu0 %978  ;;  %v738_v9 = vsel %vm601_vm2, %v3687_v13, 0.0 }
 0x47d   :  { %v983_v45 = vsub.f32 %v3631_v59, %v979_v41  ;;  %739 = vadd.xlane.f32.xlu0 %v738_v9 }
 0x47e   :  { %v982_v14 = vpop.xlane.xlu1 %981 }
 0x47f   :  { %v3692_v15 = vpop.eup %3037  ;;  %v985_v50 = vmul.f32 1.442695, %v983_v45  ;;  %v984_v18 = vsub.f32 %v3633_v63, %v982_v14 }
 0x480   :  { %v741_v53 = vsel %vm601_vm2, %v3692_v15, 0.0 }
 0x481   :  { %3043 = vpow2.f32 %v985_v50  ;;  %v987_v19 = vmul.f32 1.442695, %v984_v18  ;;  %742 = vadd.xlane.f32.xlu1 %v741_v53 }
 0x483   :  { %v3697_v20 = vpop.eup %3039  ;;  %3045 = vpow2.f32 %v987_v19 }
 0x484   :  { %v1150_v21 = vpop.xlane.xlu0 %1149  ;;  %v864_v59 = vsel %vm601_vm2, %v3697_v20, 0.0 }
 0x485   :  { %v3701_v23 = vpop.eup %3041  ;;  %v1154_v24 = vsub.f32 %v3639_v6, %v1150_v21  ;;  %865 = vadd.xlane.f32.xlu0 %v864_v59 }
 0x486   :  { %v1153_v25 = vpop.xlane.xlu1 %1152  ;;  %v867_v63 = vsel %vm601_vm2, %v3701_v23, 0.0 }
 0x487   :  { %v1156_v26 = vmul.f32 1.442695, %v1154_v24  ;;  %v1155_v27 = vsub.f32 %v3641_v11, %v1153_v25  ;;  %868 = vadd.xlane.f32.xlu1 %v867_v63 }
 0x489   :  { %3047 = vpow2.f32 %v1156_v26  ;;  %v1158_v28 = vmul.f32 1.442695, %v1155_v27 }
 0x48b   :  { %v3707_v29 = vpop.eup %3043  ;;  %3049 = vpow2.f32 %v1158_v28 }
 0x48c   :  { %v1274_v30 = vpop.xlane.xlu0 %1273  ;;  %v989_v31 = vsel %vm601_vm2, %v3707_v29, 0.0 }
 0x48d   :  { %v3711_v17 = vpop.eup %3045  ;;  %v1278_v6 = vsub.f32 %v3647_v22, %v1274_v30  ;;  %990 = vadd.xlane.f32.xlu0 %v989_v31 }
 0x48e   :  { %v1277_v35 = vpop.xlane.xlu1 %1276  ;;  %v992_v38 = vsel %vm601_vm2, %v3711_v17, 0.0 }
 0x48f   :  { %v1280_v11 = vmul.f32 1.442695, %v1278_v6  ;;  %v1279_v39 = vsub.f32 %v3649_v16, %v1277_v35  ;;  %993 = vadd.xlane.f32.xlu1 %v992_v38 }
 0x491   :  { %3051 = vpow2.f32 %v1280_v11  ;;  %v1282_v42 = vmul.f32 1.442695, %v1279_v39 }
 0x493   :  { %v3717_v44 = vpop.eup %3047  ;;  %3053 = vpow2.f32 %v1282_v42 }
 0x494   :  { %v1400_v47 = vpop.xlane.xlu0 %1399  ;;  %v1160_v48 = vsel %vm601_vm2, %v3717_v44, 0.0 }
 0x495   :  { %v3721_v51 = vpop.eup %3049  ;;  %1161 = vadd.xlane.f32.xlu0 %v1160_v48  ;;  %v1404_v19 = vsub.f32 %v3655_v10, %v1400_v47 }
 0x496   :  { %v1403_v22 = vpop.xlane.xlu1 %1402  ;;  %v1163_v52 = vsel %vm601_vm2, %v3721_v51, 0.0 }
 0x497   :  { %v1405_v54 = vsub.f32 %v3657_v32, %v1403_v22  ;;  %1164 = vadd.xlane.f32.xlu1 %v1163_v52  ;;  %v1406_v21 = vmul.f32 1.442695, %v1404_v19 }
 0x498   :  { %v616_v16 = vpop.xlane.xlu0 %615 }
 0x499   :  { %v1408_v55 = vmul.f32 1.442695, %v1405_v54  ;;  %3055 = vrcp.f32 %v616_v16 }
 0x49a   :  { %v619_v57 = vpop.xlane.xlu1 %618 }
 0x49b   :  { %v3726_v58 = vpop.eup %3051  ;;  %3057 = vpow2.f32 %v1408_v55 }
 0x49c   :  { %3059 = vrcp.f32 %v619_v57  ;;  %v1525_v60 = vpop.xlane.xlu0 %1524  ;;  %v1284_v61 = vsel %vm601_vm2, %v3726_v58, 0.0 }
 0x49d   :  { %v3730_v1 = vpop.eup %3053  ;;  %v1529_v2 = vsub.f32 %v3671_v46, %v1525_v60  ;;  %1285 = vadd.xlane.f32.xlu1 %v1284_v61 }
 0x49e   :  { %v1528_v3 = vpop.xlane.xlu1 %1527  ;;  %v1287_v7 = vsel %vm601_vm2, %v3730_v1, 0.0 }
 0x49f   :  { %v1531_v32 = vmul.f32 1.442695, %v1529_v2  ;;  %v1530_v4 = vsub.f32 %v3673_v49, %v1528_v3 }
 0x4a0   :  { %v751_v18 = vpop.permute.xlu0 %750 }
 0x4a1   :  { %3061 = vpow2.f32 %v1531_v32  ;;  %v1533_v8 = vmul.f32 1.442695, %v1530_v4  ;;  %1288 = vadd.xlane.f32.xlu1 %v1287_v7 }
 0x4a2   :  { %v876_v24 = vpop.permute.xlu1 %875 }
 0x4a3   :  { %3063 = vpow2.f32 %v1533_v8  ;;  %v3056_v12 = vpop.eup %3055 }
 0x4a4   :  { %v622_v46 = vmul.f32 %v3056_v12, %v3661_v37  ;;  %3065 = vpow2.f32 %v1406_v21 }
 0x4a5   :  { %v3736_v41 = vpop.eup %3057 }
 0x4a6   :  { %v3060_v9 = vpop.eup %3059  ;;  %v1413_v45 = vsel %vm601_vm2, %v3736_v41, 0.0 }
 0x4a7   :  { %v623_v14 = vmul.f32 %v3060_v9, %v3667_v40  ;;  %1414 = vadd.xlane.f32.xlu1 %v1413_v45 }
 0x4a9   :  { %v624_v49 = vpack.c.bf16 %v623_v14, %v622_v46 }
 0x4ab   :  { %v3742_v50 = vpop.eup %3061  ;;  %2804 = vmatmul.mubr.msk.bf16.vlgmr.msra.gmra.mrb[8].mxu0 %vm601_vm2, %v624_v49  ;;  %1000 = vrot.lane.b32.xlu0 %v3562_v0, %s3355_s28 }
 0x4ac   :  { %2814 = vmatpush3.bf16.msra.mxu0 %v751_v18  ;;  %v1535_v53 = vsel %vm601_vm2, %v3742_v50, 0.0  ;;  %2815 = vmatprep.mubr.msk.bf16.mxu0 %vm3353_vm0, %v3352_v33 }
 0x4ad   :  { %v3751_v37 = vpop.eup %3063  ;;  %1536 = vadd.xlane.f32.xlu1 %v1535_v53  ;;  %2825 = vmatprep.subr.bf16.mxu0 %v3352_v33 }
 0x4ae   :  { %v1538_v40 = vsel %vm601_vm2, %v3751_v37, 0.0  ;;  %v3759_v0 = vpop.eup %3065 }
 0x4af   :  { %v1410_v59 = vsel %vm601_vm2, %v3759_v0, 0.0 }
 0x4b1   :  { %1539 = vadd.xlane.f32.xlu1 %v1538_v40 }
 0x4c2   :  { %1296 = vrot.lane.b32.xlu1 %v3560_v62, %s3354_s7 }
 0x4ca   :  { %1411 = vadd.xlane.f32.xlu0 %v1410_v59 }
 0x4e0   :  { %1421 = vrot.lane.b32.xlu0 %v3560_v62, %s3349_s8 }
 0x4e4   :  { %1546 = vrot.lane.b32.xlu0 %v3560_v62, %s3355_s28 }
 0x50a   :  { %v740_v25 = vpop.xlane.xlu0 %739 }
 0x50b   :  { %3067 = vrcp.f32 %v740_v25 }
 0x50e   :  { %v743_v10 = vpop.xlane.xlu1 %742 }
 0x50f   :  { %3069 = vrcp.f32 %v743_v10 }
 0x512   :  { %v866_v63 = vpop.xlane.xlu0 %865 }
 0x513   :  { %3071 = vrcp.f32 %v866_v63 }
 0x514   :  { %v869_v26 = vpop.xlane.xlu1 %868 }
 0x515   :  { %3073 = vrcp.f32 %v869_v26  ;;  %v3068_v27 = vpop.eup %3067 }
 0x516   :  { %v746_v30 = vmul.f32 %v3068_v27, %v3687_v13 }
 0x519   :  { %v3070_v28 = vpop.eup %3069 }
 0x51a   :  { %v747_v31 = vmul.f32 %v3070_v28, %v3692_v15  ;;  %v991_v6 = vpop.xlane.xlu0 %990 }
 0x51b   :  { %3075 = vrcp.f32 %v991_v6 }
 0x51c   :  { %v994_v35 = vpop.xlane.xlu1 %993  ;;  %v748_v38 = vpack.c.bf16 %v747_v31, %v746_v30 }
 0x51d   :  { %3077 = vrcp.f32 %v994_v35  ;;  %v3072_v11 = vpop.eup %3071 }
 0x51e   :  { %2816 = vmatmul.mubr.msk.bf16.vlgmr.msra.gmra.mrb[12].mxu0 %vm601_vm2, %v748_v38  ;;  %v872_v13 = vmul.f32 %v3072_v11, %v3697_v20 }
 0x51f   :  { %v3074_v39 = vpop.eup %3073  ;;  %2826 = vmatpush3.bf16.msra.mxu0 %v876_v24  ;;  %2827 = vmatprep.mubr.msk.bf16.mxu0 %vm3353_vm0, %v3352_v33 }
 0x520   :  { %v873_v42 = vmul.f32 %v3074_v39, %v3701_v23  ;;  %2837 = vmatprep.subr.bf16.mxu0 %v3352_v33 }
 0x522   :  { %v1162_v15 = vpop.xlane.xlu0 %1161  ;;  %v874_v48 = vpack.c.bf16 %v873_v42, %v872_v13 }
 0x523   :  { %3079 = vrcp.f32 %v1162_v15 }
 0x524   :  { %v1165_v47 = vpop.xlane.xlu1 %1164 }
 0x525   :  { %3081 = vrcp.f32 %v1165_v47  ;;  %v3076_v22 = vpop.eup %3075 }
 0x526   :  { %v1001_v52 = vpop.permute.xlu0 %1000  ;;  %2828 = vmatmul.mubr.msk.bf16.vlgmr.msra.gmra.mrb[16].mxu0 %vm601_vm2, %v874_v48  ;;  %v997_v20 = vmul.f32 %v3076_v22, %v3707_v29 }
 0x527   :  { %v3078_v54 = vpop.eup %3077  ;;  %2838 = vmatpush3.bf16.msra.mxu0 %v1001_v52  ;;  %2839 = vmatprep.mubr.msk.bf16.mxu0 %vm3353_vm0, %v3352_v33 }
 0x528   :  { %v998_v23 = vmul.f32 %v3078_v54, %v3711_v17  ;;  %2849 = vmatprep.subr.bf16.mxu0 %v3352_v33 }
 0x52a   :  { %v1286_v16 = vpop.xlane.xlu1 %1285  ;;  %v999_v55 = vpack.c.bf16 %v998_v23, %v997_v20 }
 0x52d   :  { %v3080_v57 = vpop.eup %3079 }
 0x52e   :  { %2840 = vmatmul.mubr.msk.bf16.vlgmr.msra.gmra.mrb[20].mxu0 %vm601_vm2, %v999_v55  ;;  %v1289_v2 = vpop.xlane.xlu1 %1288  ;;  %v1168_v17 = vmul.f32 %v3080_v57, %v3717_v44 }
 0x52f   :  { %v3082_v60 = vpop.eup %3081  ;;  %2850 = vmatpush3.bf16.msra.mxu0 %v3560_v62  ;;  %2851 = vmatprep.mubr.msk.bf16.mxu0 %vm3353_vm0, %v3352_v33  ;;  %3083 = vrcp.f32 %v1289_v2 }
 0x530   :  { %v1169_v61 = vmul.f32 %v3082_v60, %v3721_v51  ;;  %2861 = vmatprep.subr.bf16.mxu0 %v3352_v33  ;;  %3085 = vrcp.f32 %v1286_v16 }
 0x532   :  { %v1170_v29 = vpack.c.bf16 %v1169_v61, %v1168_v17 }
 0x534   :  { %v1415_v3 = vpop.xlane.xlu1 %1414 }
 0x535   :  { %3087 = vrcp.f32 %v1415_v3 }
 0x536   :  { %2852 = vmatmul.mubr.msk.bf16.vlgmr.msra.gmra.mrb[24].mxu0 %vm601_vm2, %v1170_v29 }
 0x537   :  { %2863 = vmatprep.mubr.msk.bf16.mxu0 %vm3353_vm0, %v3352_v33 }
 0x539   :  { %v3084_v32 = vpop.eup %3083 }
 0x53a   :  { %v1537_v62 = vpop.xlane.xlu1 %1536  ;;  %v3086_v7 = vpop.eup %3085  ;;  %v1293_v51 = vmul.f32 %v3084_v32, %v3730_v1 }
 0x53b   :  { %v1292_v8 = vmul.f32 %v3086_v7, %v3726_v58 }
 0x53d   :  { %v1294_v44 = vpack.c.bf16 %v1293_v51, %v1292_v8 }
 0x53e   :  { %v1540_v4 = vpop.xlane.xlu1 %1539 }
 0x53f   :  { %v3088_v58 = vpop.eup %3087 }
 0x540   :  { %v1419_v46 = vmul.f32 %v3088_v58, %v3736_v41  ;;  %v3835_v58 = vld [vmem:[#allocation6] ss:$2 sm:$0x3f] }
 0x542   :  { %v1297_v12 = vpop.permute.xlu1 %1296 }
 0x543   :  { %2862 = vmatpush3.bf16.msra.mxu0 %v1297_v12 }
 0x544   :  { %2873 = vmatprep.subr.bf16.mxu0 %v3352_v33 }
 0x546   :  { %2864 = vmatmul.mubr.msk.bf16.vlgmr.msra.gmra.mrb[28].mxu0 %vm601_vm2, %v1294_v44 }
 0x547   :  { %2875 = vmatprep.mubr.msk.bf16.mxu0 %vm3353_vm0, %v3352_v33 }
 0x557   :  { %v1412_v9 = vpop.xlane.xlu0 %1411 }
 0x558   :  { %3089 = vrcp.f32 %v1412_v9 }
 0x559   :  { %3091 = vrcp.f32 %v1540_v4 }
 0x55a   :  { %3093 = vrcp.f32 %v1537_v62 }
 0x55b   :  { %v1422_v45 = vpop.permute.xlu0 %1421 }
 0x55c   :  { %2874 = vmatpush3.bf16.msra.mxu0 %v1422_v45 }
 0x55d   :  { %2885 = vmatprep.subr.bf16.mxu0 %v3352_v33 }
 0x55f   :  { %v1547_v53 = vpop.permute.xlu0 %1546 }
 0x562   :  { %v3090_v1 = vpop.eup %3089 }
 0x563   :  { %v1418_v14 = vmul.f32 %v3090_v1, %v3759_v0  ;;  %v3092_v18 = vpop.eup %3091  ;;  %v126_v1 = vrot.slane %v3835_v58, %v3546_v34 }
 0x564   :  { %v3094_v40 = vpop.eup %3093  ;;  %v1544_v19 = vmul.f32 %v3092_v18, %v3751_v37 }
 0x565   :  { %v1420_v49 = vpack.c.bf16 %v1419_v46, %v1418_v14  ;;  %v1543_v21 = vmul.f32 %v3094_v40, %v3742_v50  ;;  %v3168_v40 = vld [vmem:[#allocation3] sm:$0xff] }
 0x567   :  { %2876 = vmatmul.mubr.msk.bf16.vlgmr.msra.gmra.mrb[32].mxu0 %vm601_vm2, %v1420_v49  ;;  %v1545_v59 = vpack.c.bf16 %v1544_v19, %v1543_v21 }
 0x568   :  { %2886 = vmatpush3.bf16.msra.mxu0 %v1547_v53  ;;  %2887 = vmatprep.mubr.msk.bf16.mxu0 %vm3353_vm0, %v3352_v33 }
 0x56f   :  { %2888 = vmatmul.mubr.msk.bf16.vlgmr.msra.gmra.mrb[36].mxu0 %vm601_vm2, %v1545_v59 }
 0x570   :  { %2018 = vmatprep.mubr.bf16.mxu0 %v3351_v43 }
 0x57e   :  { %v662_v41 = vpop.f32.mrb[8].mxu0 }
 0x57f   :  { %669 = vst.msk [vmem:[#allocation2] sm:$0xff] %vm551_vm1, %v662_v41  ;;  %v2805_v0 = vpop.f32.mrb[9].mxu0 }
 0x580   :  { %v665_v24 = vpop.f32.mrb[10].mxu0 }
 0x581   :  { %670 = vst.msk [vmem:[#allocation2 + $0x8] sm:$0xff] %vm551_vm1, %v665_v24  ;;  %v2806_v25 = vpop.f32.mrb[11].mxu0 }
 0x5f1   :  { %v790_v10 = vpop.f32.mrb[12].mxu0 }
 0x5f2   :  { %797 = vst.msk [vmem:[#allocation2 + $0x10] sm:$0xff] %vm551_vm1, %v790_v10  ;;  %v2817_v33 = vpop.f32.mrb[13].mxu0 }
 0x5f3   :  { %v793_v37 = vpop.f32.mrb[14].mxu0  ;;  %v3169_v33 = vld [vmem:[#allocation3 + $0x8] sm:$0xff] }
 0x5f4   :  { %798 = vst.msk [vmem:[#allocation2 + $0x18] sm:$0xff] %vm551_vm1, %v793_v37  ;;  %v2818_v50 = vpop.f32.mrb[15].mxu0 }
 0x5f9   :  { %v915_v63 = vpop.f32.mrb[16].mxu0 }
 0x5fa   :  { %922 = vst.msk [vmem:[#allocation2 + $0x20] sm:$0xff] %vm551_vm1, %v915_v63  ;;  %v2829_v26 = vpop.f32.mrb[17].mxu0 }
 0x5fb   :  { %v918_v27 = vpop.f32.mrb[18].mxu0  ;;  %v1053_v28 = vld [vmem:[#allocation2 + $0x1] ss:$4 sm:$0xff]  ;;  %v1057_v31 = vld [vmem:[#allocation2 + $0x2] ss:$4 sm:$0xff] }
 0x5fc   :  { %923 = vst.msk [vmem:[#allocation2 + $0x28] sm:$0xff] %vm551_vm1, %v918_v27  ;;  %1066 = vrot.lane.b32.xlu0 %v1053_v28, %s3355_s28  ;;  %v2830_v30 = vpop.f32.mrb[19].mxu0  ;;  %v1061_v11 = vld [vmem:[#allocation2 + $0x3] ss:$4 sm:$0xff]  ;;  %v1049_v42 = vld [vmem:[#allocation2] ss:$4 sm:$0xff] }
 0x5fd   :  { %v3851_v27 = vld [vmem:[#allocation6 + $0x1] ss:$2 sm:$0x3f] }
 0x5fe   :  { %v159_v28 = vrot.slane %v3851_v27, %v3546_v34 }
 0x600   :  { %1074 = vrot.lane.b32.xlu0 %v1057_v31, %s3349_s8 }
 0x601   :  { %v1040_v6 = vpop.f32.mrb[20].mxu0 }
 0x602   :  { %1047 = vst.msk [vmem:[#allocation2 + $0x30] sm:$0xff] %vm551_vm1, %v1040_v6  ;;  %v2841_v35 = vpop.f32.mrb[21].mxu0 }
 0x603   :  { %v1043_v38 = vpop.f32.mrb[22].mxu0 }
 0x604   :  { %1048 = vst.msk [vmem:[#allocation2 + $0x38] sm:$0xff] %vm551_vm1, %v1043_v38  ;;  %1082 = vrot.lane.b32.xlu0 %v1061_v11, %s3354_s7  ;;  %v2842_v39 = vpop.f32.mrb[23].mxu0  ;;  %v3171_v11 = vld [vmem:[#allocation3 + $0x10] sm:$0xff] }
 0x609   :  { %v1208_v13 = vpop.f32.mrb[24].mxu0 }
 0x60a   :  { %1215 = vst.msk [vmem:[#allocation2] sm:$0xff] %vm551_vm1, %v1208_v13  ;;  %v2853_v15 = vpop.f32.mrb[25].mxu0 }
 0x60b   :  { %v1211_v47 = vpop.f32.mrb[26].mxu0  ;;  %v1055_v48 = vld [vmem:[#allocation2 + $0x21] ss:$4 sm:$0xff]  ;;  %v1059_v52 = vld [vmem:[#allocation2 + $0x22] ss:$4 sm:$0xff] }
 0x60c   :  { %1216 = vst.msk [vmem:[#allocation2 + $0x8] sm:$0xff] %vm551_vm1, %v1211_v47  ;;  %1068 = vrot.lane.b32.xlu1 %v1055_v48, %s3355_s28  ;;  %v2854_v22 = vpop.f32.mrb[27].mxu0  ;;  %v1063_v54 = vld [vmem:[#allocation2 + $0x23] ss:$4 sm:$0xff]  ;;  %v1051_v2 = vld [vmem:[#allocation2 + $0x20] ss:$4 sm:$0xff] }
 0x610   :  { %1076 = vrot.lane.b32.xlu1 %v1059_v52, %s3349_s8 }
 0x614   :  { %1084 = vrot.lane.b32.xlu1 %v1063_v54, %s3354_s7 }
 0x619   :  { %v1336_v23 = vpop.f32.mrb[28].mxu0 }
 0x61a   :  { %1343 = vst.msk [vmem:[#allocation2 + $0x10] sm:$0xff] %vm551_vm1, %v1336_v23  ;;  %v2865_v20 = vpop.f32.mrb[29].mxu0  ;;  %v3172_v23 = vld [vmem:[#allocation3 + $0x18] sm:$0xff] }
 0x61b   :  { %v1339_v16 = vpop.f32.mrb[30].mxu0 }
 0x61c   :  { %1344 = vst.msk [vmem:[#allocation2 + $0x18] sm:$0xff] %vm551_vm1, %v1339_v16  ;;  %v2866_v55 = vpop.f32.mrb[31].mxu0 }
 0x623   :  { %v1597_v57 = vld [vmem:[#allocation2 + $0x1] ss:$4 sm:$0xff]  ;;  %v1599_v60 = vld [vmem:[#allocation2 + $0x2] ss:$4 sm:$0xff]  ;;  %v1601_v61 = vld [vmem:[#allocation2 + $0x3] ss:$4 sm:$0xff] }
 0x624   :  { %1605 = vrot.lane.b32.xlu0 %v1597_v57, %s3355_s28  ;;  %v1595_v26 = vld [vmem:[#allocation2] ss:$4 sm:$0xff] }
 0x628   :  { %1613 = vrot.lane.b32.xlu0 %v1599_v60, %s3349_s8 }
 0x62c   :  { %1621 = vrot.lane.b32.xlu0 %v1601_v61, %s3354_s7 }
 0x63a   :  { %v1461_v17 = vpop.f32.mrb[32].mxu0 }
 0x63b   :  { %1468 = vst.msk [vmem:[#allocation2 + $0x20] sm:$0xff] %vm551_vm1, %v1461_v17  ;;  %v2877_v29 = vpop.f32.mrb[33].mxu0 }
 0x63c   :  { %v1464_v3 = vpop.f32.mrb[34].mxu0 }
 0x63d   :  { %1469 = vst.msk [vmem:[#allocation2 + $0x28] sm:$0xff] %vm551_vm1, %v1464_v3  ;;  %v2878_v62 = vpop.f32.mrb[35].mxu0  ;;  %v2945_v3 = vld [vmem:[#allocation11 + $0x4] ss:$16 sps:$4 sm:$0xff]  }
 0x63e   :  { %v2948_v62 = vld [vmem:[#allocation11 + $0xc] ss:$16 sps:$4 sm:$0xff]   ;;  %1933 = vmatprep.subr.bf16.mxu1 %v2945_v3 }
 0x63f   :  { %1986 = vmatprep.subr.bf16.mxu0 %v2948_v62  ;;  %v2595_v62 = vld [vmem:[%s3974_s5] ss:$0 sm:$0xff] }
 0x642   :  { %v1586_v32 = vpop.f32.mrb[36].mxu0 }
 0x643   :  { %1593 = vst.msk [vmem:[#allocation2 + $0x30] sm:$0xff] %vm551_vm1, %v1586_v32  ;;  %v2889_v4 = vpop.f32.mrb[37].mxu0  ;;  %v2943_v32 = vld [vmem:[#allocation11] ss:$16 sps:$4 sm:$0xff]  }
 0x644   :  { %v1589_v7 = vpop.f32.mrb[38].mxu0  ;;  %v2946_v4 = vld [vmem:[#allocation11 + $0x8] ss:$16 sps:$4 sm:$0xff]   ;;  %1934 = vmatpush1.bf16.msra.mxu1 %v2943_v32 }
 0x645   :  { %1594 = vst.msk [vmem:[#allocation2 + $0x38] sm:$0xff] %vm551_vm1, %v1589_v7  ;;  %v2890_v51 = vpop.f32.mrb[39].mxu0  ;;  %1987 = vmatpush1.bf16.msra.mxu0 %v2946_v4  ;;  %v2951_v7 = vld [vmem:[#allocation11 + $0x24] ss:$16 sps:$4 sm:$0xff]  }
 0x646   :  { %v2954_v51 = vld [vmem:[#allocation11 + $0x2c] ss:$16 sps:$4 sm:$0xff]   ;;  %1935 = vmatprep.subr.bf16.mxu1 %v2951_v7  ;;  %v3894_v7 = vsub.s32 3, %v3523_v56 }
 0x647   :  { %1988 = vmatprep.subr.bf16.mxu0 %v2954_v51 }
 0x64c   :  { %v1598_v8 = vld [vmem:[#allocation2 + $0x21] ss:$4 sm:$0xff]  ;;  %v1600_v12 = vld [vmem:[#allocation2 + $0x22] ss:$4 sm:$0xff]  ;;  %v1602_v44 = vld [vmem:[#allocation2 + $0x23] ss:$4 sm:$0xff] }
 0x64d   :  { %1607 = vrot.lane.b32.xlu1 %v1598_v8, %s3355_s28  ;;  %v1596_v15 = vld [vmem:[#allocation2 + $0x20] ss:$4 sm:$0xff] }
 0x64e   :  { %v2949_v8 = vld [vmem:[#allocation11 + $0x20] ss:$16 sps:$4 sm:$0xff]  }
 0x64f   :  { %1936 = vmatpush1.bf16.msra.mxu1 %v2949_v8 }
 0x651   :  { %1615 = vrot.lane.b32.xlu1 %v1600_v12, %s3349_s8  ;;  %v2952_v12 = vld [vmem:[#allocation11 + $0x28] ss:$16 sps:$4 sm:$0xff]  }
 0x652   :  { %1989 = vmatpush1.bf16.msra.mxu0 %v2952_v12  ;;  %v138_v12 = vrot.slane %v3835_v58, %v3894_v7 }
 0x655   :  { %1623 = vrot.lane.b32.xlu1 %v1602_v44, %s3354_s7 }
 0x66e   :  { %v1067_v9 = vpop.permute.xlu0 %1066 }
 0x66f   :  { %v1088_v46 = vsel %vm551_vm1, %v1049_v42, %v1067_v9  ;;  %v2957_v9 = vld [vmem:[#allocation11 + $0x44] ss:$16 sps:$4 sm:$0xff]  }
 0x670   :  { %1937 = vmatprep.subr.bf16.mxu1 %v2957_v9 }
 0x672   :  { %v1075_v45 = vpop.permute.xlu0 %1074 }
 0x673   :  { %v1091_v14 = vsel %vm1090_vm3, %v1088_v46, %v1075_v45  ;;  %v2960_v45 = vld [vmem:[#allocation11 + $0x4c] ss:$16 sps:$4 sm:$0xff]   ;;  %v2955_v46 = vld [vmem:[#allocation11 + $0x40] ss:$16 sps:$4 sm:$0xff]  }
 0x674   :  { %1990 = vmatprep.subr.bf16.mxu0 %v2960_v45  ;;  %1938 = vmatpush1.bf16.msra.mxu1 %v2955_v46 }
 0x676   :  { %v1083_v49 = vpop.permute.xlu0 %1082 }
 0x677   :  { %v1094_v18 = vsel %vm1093_vm4, %v1091_v14, %v1083_v49  ;;  %v2958_v14 = vld [vmem:[#allocation11 + $0x48] ss:$16 sps:$4 sm:$0xff]  }
 0x678   :  { %v1633_v53 = vmul.f32 %v1094_v18, %v126_v1  ;;  %1991 = vmatpush1.bf16.msra.mxu0 %v2958_v14  ;;  %v2963_v18 = vld [vmem:[#allocation11 + $0x64] ss:$16 sps:$4 sm:$0xff]  }
 0x679   :  { %1939 = vmatprep.subr.bf16.mxu1 %v2963_v18 }
 0x67a   :  { %v3842_v19 = vadd.f32 %v3168_v40, %v1633_v53  ;;  %v2966_v53 = vld [vmem:[#allocation11 + $0x6c] ss:$16 sps:$4 sm:$0xff]  }
 0x67b   :  { %1992 = vmatprep.subr.bf16.mxu0 %v2966_v53 }
 0x67c   :  { %1643 = vadd.xlane.f32.xlu0 %v3842_v19 }
 0x67e   :  { %v1069_v21 = vpop.permute.xlu1 %1068 }
 0x67f   :  { %v1089_v41 = vsel %vm551_vm1, %v1051_v2, %v1069_v21  ;;  %v2961_v21 = vld [vmem:[#allocation11 + $0x60] ss:$16 sps:$4 sm:$0xff]  }
 0x680   :  { %1940 = vmatpush1.bf16.msra.mxu1 %v2961_v21 }
 0x682   :  { %v1077_v59 = vpop.permute.xlu1 %1076 }
 0x683   :  { %v1092_v0 = vsel %vm1090_vm3, %v1089_v41, %v1077_v59  ;;  %v2964_v59 = vld [vmem:[#allocation11 + $0x68] ss:$16 sps:$4 sm:$0xff]   ;;  %v2969_v41 = vld [vmem:[#allocation11 + $0x84] ss:$16 sps:$4 sm:$0xff]  }
 0x684   :  { %1993 = vmatpush1.bf16.msra.mxu0 %v2964_v59  ;;  %1941 = vmatprep.subr.bf16.mxu1 %v2969_v41 }
 0x686   :  { %v1085_v24 = vpop.permute.xlu1 %1084 }
 0x687   :  { %v1095_v25 = vsel %vm1093_vm4, %v1092_v0, %v1085_v24  ;;  %v2972_v0 = vld [vmem:[#allocation11 + $0x8c] ss:$16 sps:$4 sm:$0xff]   ;;  %v2967_v24 = vld [vmem:[#allocation11 + $0x80] ss:$16 sps:$4 sm:$0xff]  }
 0x688   :  { %v1634_v10 = vmul.f32 %v1095_v25, %v126_v1  ;;  %v2970_v25 = vld [vmem:[#allocation11 + $0x88] ss:$16 sps:$4 sm:$0xff]   ;;  %1994 = vmatprep.subr.bf16.mxu0 %v2972_v0  ;;  %1942 = vmatpush1.bf16.msra.mxu1 %v2967_v24 }
 0x689   :  { %1995 = vmatpush1.bf16.msra.mxu0 %v2970_v25 }
 0x68a   :  { %v3848_v37 = vadd.f32 %v3169_v33, %v1634_v10  ;;  %v2975_v10 = vld [vmem:[#allocation11 + $0xa4] ss:$16 sps:$4 sm:$0xff]   ;;  %v2978_v33 = vld [vmem:[#allocation11 + $0xac] ss:$16 sps:$4 sm:$0xff]  }
 0x68b   :  { %1943 = vmatprep.subr.bf16.mxu1 %v2975_v10  ;;  %1996 = vmatprep.subr.bf16.mxu0 %v2978_v33 }
 0x68c   :  { %1645 = vadd.xlane.f32.xlu1 %v3848_v37 }
 0x696   :  { %v1606_v50 = vpop.permute.xlu0 %1605 }
 0x697   :  { %v1627_v30 = vsel %vm551_vm1, %v1595_v26, %v1606_v50  ;;  %v2973_v50 = vld [vmem:[#allocation11 + $0xa0] ss:$16 sps:$4 sm:$0xff]   ;;  %v2981_v26 = vld [vmem:[#allocation11 + $0xc4] ss:$16 sps:$4 sm:$0xff]  }
 0x698   :  { %1944 = vmatpush1.bf16.msra.mxu1 %v2973_v50 }
 0x699   :  { %1945 = vmatprep.subr.bf16.mxu1 %v2981_v26 }
 0x69a   :  { %v1614_v63 = vpop.permute.xlu0 %1613 }
 0x69b   :  { %v1629_v31 = vsel %vm1090_vm3, %v1627_v30, %v1614_v63  ;;  %v2976_v63 = vld [vmem:[#allocation11 + $0xa8] ss:$16 sps:$4 sm:$0xff]   ;;  %v2984_v30 = vld [vmem:[#allocation11 + $0xcc] ss:$16 sps:$4 sm:$0xff]  }
 0x69c   :  { %1997 = vmatpush1.bf16.msra.mxu0 %v2976_v63 }
 0x69d   :  { %1998 = vmatprep.subr.bf16.mxu0 %v2984_v30 }
 0x69e   :  { %v1622_v6 = vpop.permute.xlu0 %1621 }
 0x69f   :  { %v1631_v35 = vsel %vm1093_vm4, %v1629_v31, %v1622_v6  ;;  %v2982_v31 = vld [vmem:[#allocation11 + $0xc8] ss:$16 sps:$4 sm:$0xff]   ;;  %v2987_v6 = vld [vmem:[#allocation11 + $0xe4] ss:$16 sps:$4 sm:$0xff]  }
 0x6a0   :  { %v1635_v38 = vmul.f32 %v1631_v35, %v159_v28  ;;  %v2990_v35 = vld [vmem:[#allocation11 + $0xec] ss:$16 sps:$4 sm:$0xff]   ;;  %1999 = vmatpush1.bf16.msra.mxu0 %v2982_v31 }
 0x6a1   :  { %2000 = vmatprep.subr.bf16.mxu0 %v2990_v35 }
 0x6a2   :  { %v3858_v39 = vadd.f32 %v3171_v11, %v1635_v38  ;;  %v2985_v38 = vld [vmem:[#allocation11 + $0xe0] ss:$16 sps:$4 sm:$0xff]   ;;  %v2988_v11 = vld [vmem:[#allocation11 + $0xe8] ss:$16 sps:$4 sm:$0xff]  }
 0x6a4   :  { %1647 = vadd.xlane.f32.xlu0 %v3858_v39  ;;  %2001 = vmatpush1.bf16.msra.mxu0 %v2988_v11  ;;  %v2993_v11 = vld [vmem:[#allocation12] sm:$0xff]  }
 0x6bf   :  { %v1608_v42 = vpop.permute.xlu1 %1607 }
 0x6c0   :  { %v1628_v47 = vsel %vm551_vm1, %v1596_v15, %v1608_v42 }
 0x6c3   :  { %v1616_v13 = vpop.permute.xlu1 %1615 }
 0x6c4   :  { %v1630_v48 = vsel %vm1090_vm3, %v1628_v47, %v1616_v13 }
 0x6c7   :  { %v1624_v22 = vpop.permute.xlu1 %1623 }
 0x6c8   :  { %v1632_v52 = vsel %vm1093_vm4, %v1630_v48, %v1624_v22 }
 0x6c9   :  { %v1636_v54 = vmul.f32 %v1632_v52, %v159_v28  ;;  %v2979_v28 = vld [vmem:[#allocation11 + $0xc0] ss:$16 sps:$4 sm:$0xff]  }
 0x6ca   :  { %1946 = vmatpush1.bf16.msra.mxu1 %v2979_v28 }
 0x6cb   :  { %v3864_v20 = vadd.f32 %v3172_v23, %v1636_v54  ;;  %1947 = vmatprep.subr.bf16.mxu1 %v2987_v6 }
 0x6cd   :  { %1649 = vadd.xlane.f32.xlu0 %v3864_v20 }
 0x6ce   :  { %1948 = vmatpush1.bf16.msra.mxu1 %v2985_v38  ;;  %v2992_v38 = vld [vmem:[#allocation12 + $0xc0] sm:$0xff]  }
 0x6cf   :  { %2747 = vmatprep.subr.bf16.mxu0 %v2992_v38 }
 0x709   :  { %v1644_v16 = vpop.xlane.xlu0 %1643 }
 0x70a   :  { %v1651_v55 = vmul.f32 0.0078125, %v1644_v16 }
 0x70c   :  { %v3868_v57 = vsub.f32 %v3842_v19, %v1651_v55 }
 0x70e   :  { %v1659_v60 = vmul.f32 %v3868_v57, %v3868_v57 }
 0x710   :  { %1663 = vadd.xlane.f32.xlu0 %v1659_v60 }
 0x719   :  { %v1646_v61 = vpop.xlane.xlu1 %1645 }
 0x71a   :  { %v1652_v2 = vmul.f32 0.0078125, %v1646_v61  ;;  %v145_v61 = vsub.s32 5, %v3523_v56 }
 0x71c   :  { %v3873_v17 = vsub.f32 %v3848_v37, %v1652_v2  ;;  %v2594_v2 = vld [vmem:[%s3973_s4] ss:$0 sm:$0xff]  ;;  %v146_v3 = vrot.slane %v3835_v58, %v145_v61  ;;  %v179_v0 = vrot.slane %v3851_v27, %v145_v61  ;;  %v3006_v61 = vld [vmem:[#allocation12 + $0x98] sm:$0xff]  }
 0x71e   :  { %v1660_v29 = vmul.f32 %v3873_v17, %v3873_v17  ;;  %v1707_v51 = vadd.f32 1.0, %v146_v3  ;;  %v1708_v50 = vadd.f32 1.0, %v179_v0  ;;  %v3009_v3 = vld [vmem:[#allocation12 + $0x20] sm:$0xff]  }
 0x720   :  { %1665 = vadd.xlane.f32.xlu1 %v1660_v29 }
 0x731   :  { %v1648_v44 = vpop.xlane.xlu0 %1647 }
 0x732   :  { %v1653_v1 = vmul.f32 0.0078125, %v1648_v44 }
 0x734   :  { %v3878_v49 = vsub.f32 %v3858_v39, %v1653_v1 }
 0x736   :  { %v1661_v40 = vmul.f32 %v3878_v49, %v3878_v49 }
 0x738   :  { %1667 = vadd.xlane.f32.xlu0 %v1661_v40 }
 0x75a   :  { %v1650_v42 = vpop.xlane.xlu0 %1649 }
 0x75b   :  { %v1654_v13 = vmul.f32 0.0078125, %v1650_v42  ;;  %v2994_v42 = vld [vmem:[#allocation12 + $0x80] sm:$0xff]  }
 0x75d   :  { %v1658_v15 = vsub.f32 %v3864_v20, %v1654_v13  ;;  %v2995_v13 = vld [vmem:[#allocation12 + $0x48] sm:$0xff]  }
 0x75f   :  { %v1662_v47 = vmul.f32 %v1658_v15, %v1658_v15 }
 0x761   :  { %1669 = vadd.xlane.f32.xlu1 %v1662_v47  ;;  %v2997_v47 = vld [vmem:[#allocation12 + $0x8] sm:$0xff]  }
 0x79d   :  { %v1664_v48 = vpop.xlane.xlu0 %1663 }
 0x79e   :  { %v1671_v22 = vmul.f32 0.0078125, %v1664_v48  ;;  %v2998_v48 = vld [vmem:[#allocation12 + $0x88] sm:$0xff]  }
 0x7a0   :  { %v1675_v52 = vadd.f32 1e-06, %v1671_v22  ;;  %v2999_v22 = vld [vmem:[#allocation12 + $0x50] sm:$0xff]  }
 0x7a2   :  { %3095 = vrsqrt.f32 %v1675_v52  ;;  %v3000_v52 = vld [vmem:[#allocation12 + $0xd0] sm:$0xff]  }
 0x7ac   :  { %v3096_v55 = vpop.eup %3095 }
 0x7ad   :  { %v1666_v54 = vpop.xlane.xlu1 %1665  ;;  %v1683_v60 = vmul.f32 %v3096_v55, %v3868_v57  ;;  %v3004_v55 = vld [vmem:[#allocation12 + $0xd8] sm:$0xff]  }
 0x7ae   :  { %v1672_v23 = vmul.f32 0.0078125, %v1666_v54  ;;  %v3001_v54 = vld [vmem:[#allocation12 + $0x10] sm:$0xff]  }
 0x7af   :  { %v1693_v29 = vmul.f32 %v2594_v2, %v1683_v60  ;;  %v3005_v60 = vld [vmem:[#allocation12 + $0x18] sm:$0xff]  }
 0x7b0   :  { %v1676_v16 = vadd.f32 1e-06, %v1672_v23  ;;  %v3002_v23 = vld [vmem:[#allocation12 + $0x90] sm:$0xff]  }
 0x7b1   :  { %v1703_v57 = vadd.f32 %v2595_v62, %v1693_v29  ;;  %v3008_v29 = vld [vmem:[#allocation12 + $0xe0] sm:$0xff]  }
 0x7b2   :  { %3097 = vrsqrt.f32 %v1676_v16  ;;  %v3003_v16 = vld [vmem:[#allocation12 + $0x58] sm:$0xff]  }
 0x7b3   :  { %v1709_v9 = vmul.f32 %v1707_v51, %v1703_v57  ;;  %v3013_v57 = vld [vmem:[#allocation12 + $0x28] sm:$0xff]  }
 0x7b5   :  { %v1713_v1 = vadd.f32 %v1709_v9, %v138_v12  ;;  %v3018_v9 = vld [vmem:[#allocation12 + $0xb0] sm:$0xff]  }
 0x7bc   :  { %v3098_v32 = vpop.eup %3097 }
 0x7bd   :  { %v1684_v4 = vmul.f32 %v3098_v32, %v3873_v17  ;;  %v3011_v32 = vld [vmem:[#allocation12 + $0x68] sm:$0xff]  }
 0x7bf   :  { %v1694_v8 = vmul.f32 %v2594_v2, %v1684_v4  ;;  %v3012_v4 = vld [vmem:[#allocation12 + $0xe8] sm:$0xff]  }
 0x7c1   :  { %v1704_v44 = vadd.f32 %v2595_v62, %v1694_v8  ;;  %v3015_v8 = vld [vmem:[#allocation12 + $0x70] sm:$0xff]  }
 0x7c3   :  { %v1710_v45 = vmul.f32 %v1707_v51, %v1704_v44  ;;  %v3014_v51 = vld [vmem:[#allocation12 + $0xa8] sm:$0xff]   ;;  %v3017_v44 = vld [vmem:[#allocation12 + $0x30] sm:$0xff]  }
 0x7c5   :  { %v1714_v46 = vadd.f32 %v1710_v45, %v138_v12  ;;  %v1668_v56 = vpop.xlane.xlu0 %1667  ;;  %v3016_v12 = vld [vmem:[#allocation12 + $0xf0] sm:$0xff]   ;;  %v3019_v45 = vld [vmem:[#allocation12 + $0x78] sm:$0xff]  }
 0x7c6   :  { %v1673_v17 = vmul.f32 0.0078125, %v1668_v56  ;;  %v1751_v56 = vld [vmem:[%s3978_s9] sm:$0xf] }
 0x7c7   :  { %v1717_v14 = vpack.c.bf16 %v1714_v46, %v1713_v1  ;;  %v3020_v1 = vld [vmem:[#allocation12 + $0xf8] sm:$0xff]  }
 0x7c8   :  { %v1677_v18 = vadd.f32 1e-06, %v1673_v17  ;;  %v3021_v46 = vld [vmem:[#allocation12 + $0x38] sm:$0xff]   ;;  %v3908_v17 = vrot.slane %v1751_v56, %v3546_v34 }
 0x7c9   :  { %1966 = vmatmul.mubr.bf16.vlgmr.msra.gmra.mrb[36].mxu1 %v1717_v14  ;;  %2019 = vmatmul.mubr.bf16.vlgmr.msra.gmra.mrb[40].mxu0 %v1717_v14  ;;  %v3022_v14 = vld [vmem:[#allocation12 + $0xb8] sm:$0xff]  }
 0x7ca   :  { %1975 = vmatprep.mubr.bf16.mxu1 %v3351_v43  ;;  %2028 = vmatprep.mubr.bf16.mxu0 %v3351_v43  ;;  %3099 = vrsqrt.f32 %v1677_v18  ;;  %v171_v43 = vrot.slane %v3851_v27, %v3894_v7  ;;  %v3911_v18 = vrot.slane %v1751_v56, %v3531_v5 }
 0x7cb   :  { %2748 = vmatpush3.bf16.msra.mxu0 %v2994_v42 }
 0x7d4   :  { %v3100_v59 = vpop.eup %3099 }
 0x7d5   :  { %v1685_v41 = vmul.f32 %v3100_v59, %v3878_v49  ;;  %v2991_v49 = vld [vmem:[#allocation12 + $0x40] sm:$0xff]  }
 0x7d6   :  { %2719 = vmatprep.subr.bf16.mxu1 %v2991_v49 }
 0x7d7   :  { %v1695_v24 = vmul.f32 %v2594_v2, %v1685_v41  ;;  %2720 = vmatpush3.bf16.msra.mxu1 %v2993_v11 }
 0x7d8   :  { %2721 = vmatprep.subr.bf16.mxu1 %v2995_v13 }
 0x7d9   :  { %v1705_v33 = vadd.f32 %v2595_v62, %v1695_v24 }
 0x7db   :  { %v1711_v28 = vmul.f32 %v1708_v50, %v1705_v33  ;;  %2722 = vmatpush3.bf16.msra.mxu1 %v2997_v47 }
 0x7dc   :  { %2723 = vmatprep.subr.bf16.mxu1 %v2999_v22 }
 0x7dd   :  { %v1715_v31 = vadd.f32 %v1711_v28, %v171_v43 }
 0x7df   :  { %2724 = vmatpush3.bf16.msra.mxu1 %v3001_v54 }
 0x7e0   :  { %2725 = vmatprep.subr.bf16.mxu1 %v3003_v16 }
 0x7e3   :  { %2726 = vmatpush3.bf16.msra.mxu1 %v3005_v60 }
 0x7ee   :  { %v1670_v53 = vpop.xlane.xlu1 %1669 }
 0x7ef   :  { %v1674_v40 = vmul.f32 0.0078125, %v1670_v53  ;;  %v3914_v53 = vrot.slane %v1751_v56, %v3552_v36 }
 0x7f1   :  { %v1678_v21 = vadd.f32 1e-06, %v1674_v40  ;;  %v3917_v40 = vrot.slane %v1751_v56, %v3894_v7 }
 0x7f3   :  { %3101 = vrsqrt.f32 %v1678_v21 }
 0x7fd   :  { %v3102_v25 = vpop.eup %3101 }
 0x7fe   :  { %v1686_v10 = vmul.f32 %v3102_v25, %v1658_v15  ;;  %v2996_v15 = vld [vmem:[#allocation12 + $0xc8] sm:$0xff]  }
 0x7ff   :  { %2749 = vmatprep.subr.bf16.mxu0 %v2996_v15 }
 0x800   :  { %v1696_v63 = vmul.f32 %v2594_v2, %v1686_v10  ;;  %2750 = vmatpush3.bf16.msra.mxu0 %v2998_v48  ;;  %v3007_v2 = vld [vmem:[#allocation12 + $0x60] sm:$0xff]  }
 0x801   :  { %2751 = vmatprep.subr.bf16.mxu0 %v3000_v52  ;;  %2727 = vmatprep.subr.bf16.mxu1 %v3007_v2 }
 0x802   :  { %v1706_v26 = vadd.f32 %v2595_v62, %v1696_v63  ;;  %v3010_v62 = vld [vmem:[#allocation12 + $0xa0] sm:$0xff]   ;;  %2728 = vmatpush3.bf16.msra.mxu1 %v3009_v3 }
 0x803   :  { %2729 = vmatprep.subr.bf16.mxu1 %v3011_v32 }
 0x804   :  { %v1712_v30 = vmul.f32 %v1708_v50, %v1706_v26  ;;  %2752 = vmatpush3.bf16.msra.mxu0 %v3002_v23 }
 0x805   :  { %2753 = vmatprep.subr.bf16.mxu0 %v3004_v55 }
 0x806   :  { %v1716_v6 = vadd.f32 %v1712_v30, %v171_v43  ;;  %2730 = vmatpush3.bf16.msra.mxu1 %v3013_v57 }
 0x807   :  { %2731 = vmatprep.subr.bf16.mxu1 %v3015_v8 }
 0x808   :  { %v1718_v35 = vpack.c.bf16 %v1716_v6, %v1715_v31  ;;  %2754 = vmatpush3.bf16.msra.mxu0 %v3006_v61 }
 0x809   :  { %2755 = vmatprep.subr.bf16.mxu0 %v3008_v29 }
 0x80a   :  { %1976 = vmatmul.mubr.bf16.gmra.mrb[40].mxu1 %v1718_v35  ;;  %2029 = vmatmul.mubr.bf16.gmra.mrb[44].mxu0 %v1718_v35 }
 0x80b   :  { %2732 = vmatpush3.bf16.msra.mxu1 %v3017_v44 }
 0x80c   :  { %2756 = vmatpush3.bf16.msra.mxu0 %v3010_v62  ;;  %2733 = vmatprep.subr.bf16.mxu1 %v3019_v45 }
 0x80d   :  { %2757 = vmatprep.subr.bf16.mxu0 %v3012_v4 }
 0x80f   :  { %2734 = vmatpush3.bf16.msra.mxu1 %v3021_v46 }
 0x810   :  { %2758 = vmatpush3.bf16.msra.mxu0 %v3014_v51 }
 0x811   :  { %2759 = vmatprep.subr.bf16.mxu0 %v3016_v12 }
 0x814   :  { %2760 = vmatpush3.bf16.msra.mxu0 %v3018_v9 }
 0x815   :  { %2761 = vmatprep.subr.bf16.mxu0 %v3020_v1 }
 0x818   :  { %2762 = vmatpush3.bf16.msra.mxu0 %v3022_v14 }
 0x89c   :  { %v1967_v21 = vpop.f32.mrb[36].mxu1  ;;  %v2020_v59 = vpop.f32.mrb[40].mxu0 }
 0x89d   :  { %v1968_v41 = vadd.f32 %v1967_v21, %v3908_v17  ;;  %v2021_v0 = vadd.f32 %v2020_v59, %v3911_v18  ;;  %v1969_v24 = vpop.f32.mrb[37].mxu1  ;;  %v2022_v25 = vpop.f32.mrb[41].mxu0 }
 0x89e   :  { %v1970_v34 = vadd.f32 %v1969_v24, %v3914_v53  ;;  %v3923_v10 = vadd.f32 %v2022_v25, %v3917_v40  ;;  %v1971_v5 = vpop.f32.mrb[38].mxu1  ;;  %v2024_v33 = vpop.f32.mrb[42].mxu0 }
 0x89f   :  { %v2628_v50 = vmul.f32 -1.442695, %v1968_v41  ;;  %v2630_v63 = vmul.f32 -1.442695, %v2021_v0  ;;  %v1972_v7 = vadd.f32 %v1971_v5, %v3908_v17  ;;  %v2025_v43 = vadd.f32 %v2024_v33, %v3911_v18  ;;  %v1973_v26 = vpop.f32.mrb[39].mxu1  ;;  %v2026_v28 = vpop.f32.mrb[43].mxu0 }
 0x8a0   :  { %v2629_v30 = vmul.f32 -1.442695, %v1970_v34  ;;  %v2631_v31 = vmul.f32 -1.442695, %v3923_v10  ;;  %v1974_v6 = vadd.f32 %v1973_v26, %v3914_v53  ;;  %v2027_v35 = vadd.f32 %v2026_v28, %v3917_v40 }
 0x8a1   :  { %3103 = vpow2.f32 %v2628_v50  ;;  %v2632_v49 = vmul.f32 -1.442695, %v1972_v7  ;;  %v2634_v38 = vmul.f32 -1.442695, %v2025_v43 }
 0x8a2   :  { %3105 = vpow2.f32 %v2630_v63  ;;  %v2633_v11 = vmul.f32 -1.442695, %v1974_v6  ;;  %v2635_v42 = vmul.f32 -1.442695, %v2027_v35 }
 0x8a3   :  { %3107 = vpow2.f32 %v2629_v30 }
 0x8a4   :  { %3109 = vpow2.f32 %v2631_v31 }
 0x8a5   :  { %3111 = vpow2.f32 %v2632_v49 }
 0x8a6   :  { %3113 = vpow2.f32 %v2634_v38 }
 0x8a7   :  { %3115 = vpow2.f32 %v2633_v11 }
 0x8a8   :  { %3117 = vpow2.f32 %v2635_v42 }
 0x8ab   :  { %v3104_v13 = vpop.eup %3103 }
 0x8ac   :  { %v3106_v15 = vpop.eup %3105  ;;  %v2087_v47 = vadd.f32 1.0, %v3104_v13 }
 0x8ad   :  { %v3108_v48 = vpop.eup %3107  ;;  %v2089_v22 = vadd.f32 1.0, %v3106_v15 }
 0x8ae   :  { %v3110_v52 = vpop.eup %3109  ;;  %3119 = vrcp.f32 %v2087_v47  ;;  %v2088_v54 = vadd.f32 1.0, %v3108_v48 }
 0x8af   :  { %v3112_v23 = vpop.eup %3111  ;;  %3121 = vrcp.f32 %v2089_v22  ;;  %v2090_v16 = vadd.f32 1.0, %v3110_v52 }
 0x8b0   :  { %v3114_v55 = vpop.eup %3113  ;;  %3123 = vrcp.f32 %v2088_v54  ;;  %v2091_v60 = vadd.f32 1.0, %v3112_v23 }
 0x8b1   :  { %v3116_v61 = vpop.eup %3115  ;;  %3125 = vrcp.f32 %v2090_v16  ;;  %v2093_v2 = vadd.f32 1.0, %v3114_v55 }
 0x8b2   :  { %v3118_v29 = vpop.eup %3117  ;;  %3127 = vrcp.f32 %v2091_v60  ;;  %v2092_v3 = vadd.f32 1.0, %v3116_v61 }
 0x8b3   :  { %3129 = vrcp.f32 %v2093_v2  ;;  %v2094_v62 = vadd.f32 1.0, %v3118_v29 }
 0x8b4   :  { %3131 = vrcp.f32 %v2092_v3 }
 0x8b5   :  { %3133 = vrcp.f32 %v2094_v62 }
 0x8b8   :  { %v3120_v32 = vpop.eup %3119 }
 0x8b9   :  { %v3122_v4 = vpop.eup %3121  ;;  %v2135_v44 = vmul.f32 %v3120_v32, %v1968_v41 }
 0x8ba   :  { %v3124_v57 = vpop.eup %3123  ;;  %v2137_v1 = vmul.f32 %v3122_v4, %v2021_v0 }
 0x8bb   :  { %v3126_v51 = vpop.eup %3125  ;;  %v2136_v56 = vmul.f32 %v3124_v57, %v1970_v34 }
 0x8bc   :  { %v3128_v8 = vpop.eup %3127  ;;  %v2138_v24 = vmul.f32 %v3126_v51, %v3923_v10 }
 0x8bd   :  { %v3130_v12 = vpop.eup %3129  ;;  %v2139_v9 = vmul.f32 %v3128_v8, %v1972_v7 }
 0x8be   :  { %v3132_v45 = vpop.eup %3131  ;;  %v2141_v46 = vmul.f32 %v3130_v12, %v2025_v43 }
 0x8bf   :  { %v3134_v14 = vpop.eup %3133  ;;  %v2151_v21 = vpack.c.bf16 %v2139_v9, %v2135_v44  ;;  %v2140_v59 = vmul.f32 %v3132_v45, %v1974_v6 }
 0x8c0   :  { %v2153_v25 = vpack.c.bf16 %v2141_v46, %v2137_v1  ;;  %v2142_v5 = vmul.f32 %v3134_v14, %v2027_v35 }
 0x8c1   :  { %v2152_v33 = vpack.c.bf16 %v2140_v59, %v2136_v56 }
 0x8c2   :  { %v2154_v50 = vpack.c.bf16 %v2142_v5, %v2138_v24 }
 0x8c3   :  { %2454 = vmatprep.mubr.bf16.mxu1 %v2152_v33 }
 0x8c4   :  { %2503 = vmatprep.mubr.bf16.mxu0 %v2154_v50  ;;  %2455 = vmatmul.mubr.bf16.vlgmr.msra.gmra.mrb[44].mxu1 %v2151_v21 }
 0x8c5   :  { %2504 = vmatmul.mubr.bf16.vlgmr.msra.gmra.mrb[48].mxu0 %v2153_v25 }
 0x8dd   :  { %v1977_v63 = vpop.f32.mrb[40].mxu1  ;;  %v2030_v41 = vpop.f32.mrb[44].mxu0 }
 0x8de   :  { %v1978_v7 = vadd.f32 %v1977_v63, %v3908_v17  ;;  %v2031_v0 = vadd.f32 %v2030_v41, %v3911_v18  ;;  %v1979_v43 = vpop.f32.mrb[41].mxu1  ;;  %v2032_v34 = vpop.f32.mrb[45].mxu0 }
 0x8df   :  { %v1980_v26 = vadd.f32 %v1979_v43, %v3914_v53  ;;  %v3935_v10 = vadd.f32 %v2032_v34, %v3917_v40  ;;  %v1981_v28 = vpop.f32.mrb[42].mxu1  ;;  %v2034_v30 = vpop.f32.mrb[46].mxu0 }
 0x8e0   :  { %v2636_v31 = vmul.f32 -1.442695, %v1978_v7  ;;  %v2638_v6 = vmul.f32 -1.442695, %v2031_v0  ;;  %v1982_v35 = vadd.f32 %v1981_v28, %v3908_v17  ;;  %v2035_v49 = vadd.f32 %v2034_v30, %v3911_v18  ;;  %v1983_v38 = vpop.f32.mrb[43].mxu1  ;;  %v2036_v11 = vpop.f32.mrb[47].mxu0 }
 0x8e1   :  { %v2637_v42 = vmul.f32 -1.442695, %v1980_v26  ;;  %v2639_v13 = vmul.f32 -1.442695, %v3935_v10  ;;  %v1984_v15 = vadd.f32 %v1983_v38, %v3914_v53  ;;  %v2037_v47 = vadd.f32 %v2036_v11, %v3917_v40 }
 0x8e2   :  { %3135 = vpow2.f32 %v2636_v31  ;;  %v2640_v48 = vmul.f32 -1.442695, %v1982_v35  ;;  %v2642_v22 = vmul.f32 -1.442695, %v2035_v49  ;;  %v130_v38 = vrot.slane %v3835_v58, %v3552_v36 }
 0x8e3   :  { %3137 = vpow2.f32 %v2638_v6  ;;  %v2641_v52 = vmul.f32 -1.442695, %v1984_v15  ;;  %v2643_v54 = vmul.f32 -1.442695, %v2037_v47 }
 0x8e4   :  { %3139 = vpow2.f32 %v2637_v42 }
 0x8e5   :  { %3141 = vpow2.f32 %v2639_v13 }
 0x8e6   :  { %3143 = vpow2.f32 %v2640_v48 }
 0x8e7   :  { %3145 = vpow2.f32 %v2642_v22 }
 0x8e8   :  { %3147 = vpow2.f32 %v2641_v52 }
 0x8e9   :  { %3149 = vpow2.f32 %v2643_v54 }
 0x8ec   :  { %v3136_v17 = vpop.eup %3135 }
 0x8ed   :  { %v3138_v18 = vpop.eup %3137  ;;  %v2095_v23 = vadd.f32 1.0, %v3136_v17 }
 0x8ee   :  { %v3140_v16 = vpop.eup %3139  ;;  %v2097_v55 = vadd.f32 1.0, %v3138_v18 }
 0x8ef   :  { %v3142_v53 = vpop.eup %3141  ;;  %3151 = vrcp.f32 %v2095_v23  ;;  %v2096_v40 = vadd.f32 1.0, %v3140_v16 }
 0x8f0   :  { %v3144_v60 = vpop.eup %3143  ;;  %3153 = vrcp.f32 %v2097_v55  ;;  %v2098_v61 = vadd.f32 1.0, %v3142_v53 }
 0x8f1   :  { %v3146_v2 = vpop.eup %3145  ;;  %3155 = vrcp.f32 %v2096_v40  ;;  %v2099_v29 = vadd.f32 1.0, %v3144_v60 }
 0x8f2   :  { %v3148_v3 = vpop.eup %3147  ;;  %3157 = vrcp.f32 %v2098_v61  ;;  %v2101_v62 = vadd.f32 1.0, %v3146_v2 }
 0x8f3   :  { %v3150_v32 = vpop.eup %3149  ;;  %3159 = vrcp.f32 %v2099_v29  ;;  %v2100_v4 = vadd.f32 1.0, %v3148_v3  ;;  %v163_v29 = vrot.slane %v3851_v27, %v3552_v36 }
 0x8f4   :  { %3161 = vrcp.f32 %v2101_v62  ;;  %v2102_v57 = vadd.f32 1.0, %v3150_v32 }
 0x8f5   :  { %3163 = vrcp.f32 %v2100_v4 }
 0x8f6   :  { %3165 = vrcp.f32 %v2102_v57 }
 0x8f9   :  { %v3152_v51 = vpop.eup %3151 }
 0x8fa   :  { %v3154_v8 = vpop.eup %3153  ;;  %v2143_v1 = vmul.f32 %v3152_v51, %v1978_v7 }
 0x8fb   :  { %v3156_v12 = vpop.eup %3155  ;;  %v2145_v56 = vmul.f32 %v3154_v8, %v2031_v0  ;;  %v2644_v0 = vld [vmem:[%s3980_s11] ss:$0 sm:$0xff]  ;;  %s3356_s11 = smov [#allocation14]  }
 0x8fc   :  { %v3158_v44 = vpop.eup %3157  ;;  %v2144_v24 = vmul.f32 %v3156_v12, %v1980_v26  ;;  %s2537_s15 = sshll.u32 %s3356_s11, 4  ;;  %s2538_s15 = int_to_ptr.vmem [resolvable:$true] %s2537_s15 }
 0x8fd   :  { %v3160_v9 = vpop.eup %3159  ;;  %v2146_v33 = vmul.f32 %v3158_v44, %v3935_v10  ;;  %s3305_s16 = scalar_lea.vmem %s2538_s15, 512  ;;  %p3310_p7 = scmp.lt.s32.totalorder %s2538_s15, %s2538_s15 }
 0x8fe   :  { %v3162_v45 = vpop.eup %3161  ;;  %v2147_v46 = vmul.f32 %v3160_v9, %v1982_v35  ;;  %p3306_p6 = scmp.ne.s32.totalorder %s2538_s15, %s3305_s16  ;;  %p3311_p8 = scmp.lt.s32.totalorder %s3305_s16, %s3305_s16 }
 0x8ff   :  { %v3164_v14 = vpop.eup %3163  ;;  %v2149_v21 = vmul.f32 %v3162_v45, %v2035_v49 }
 0x900   :  { %v3166_v59 = vpop.eup %3165  ;;  %v2148_v25 = vmul.f32 %v3164_v14, %v1984_v15  ;;  %v2155_v5 = vpack.c.bf16 %v2147_v46, %v2143_v1  ;;  %p3312_p9 = por %p3311_p8, %p3310_p7 }
 0x901   :  { %v2150_v50 = vmul.f32 %v3166_v59, %v2037_v47  ;;  %v2157_v63 = vpack.c.bf16 %v2149_v21, %v2145_v56 }
 0x902   :  { %v2156_v41 = vpack.c.bf16 %v2148_v25, %v2144_v24  ;;  %p3313_p10 = pnand %p3312_p9, %p3306_p6 }
 0x903   :  { %v2158_v43 = vpack.c.bf16 %v2150_v50, %v2146_v33 }
 0x904   :  { %2462 = vmatprep.mubr.bf16.mxu1 %v2156_v41 }
 0x905   :  { %2511 = vmatprep.mubr.bf16.mxu0 %v2158_v43  ;;  %2463 = vmatmul.mubr.bf16.gmra.mrb[48].mxu1 %v2155_v5 }
 0x906   :  { %2512 = vmatmul.mubr.bf16.gmra.mrb[52].mxu0 %v2157_v63 }
 0x997   :  { %v2735_v34 = vpop.f32.mrb[44].mxu1 }
 0x998   :  { %v2763_v7 = vpop.f32.mrb[48].mxu0  ;;  %v2736_v28 = vpop.f32.mrb[45].mxu1 }
 0x999   :  { %v2737_v26 = vadd.f32 %v2736_v28, %v2735_v34  ;;  %v2764_v30 = vpop.f32.mrb[49].mxu0  ;;  %v2738_v31 = vpop.f32.mrb[46].mxu1 }
 0x99a   :  { %v2765_v6 = vadd.f32 %v2764_v30, %v2763_v7  ;;  %v2766_v10 = vpop.f32.mrb[50].mxu0  ;;  %v2739_v35 = vpop.f32.mrb[47].mxu1 }
 0x99b   :  { %v2457_v49 = vadd.f32 %v2737_v26, %v2644_v0  ;;  %v2740_v11 = vadd.f32 %v2739_v35, %v2738_v31  ;;  %v2767_v42 = vpop.f32.mrb[51].mxu0 }
 0x99c   :  { %v2768_v13 = vadd.f32 %v2767_v42, %v2766_v10 }
 0x99d   :  { %v2506_v15 = vadd.f32 %v2765_v6, %v2457_v49  ;;  %v2460_v47 = vadd.f32 %v2740_v11, %v2644_v0 }
 0x99f   :  { %v2520_v48 = vmul.f32 %v2506_v15, %v130_v38  ;;  %v2509_v22 = vadd.f32 %v2768_v13, %v2460_v47 }
 0x9a1   :  { %v2524_v52 = vadd.f32 %v2520_v48, %v3842_v19  ;;  %v2521_v54 = vmul.f32 %v2509_v22, %v130_v38 }
 0x9a3   :  { %2528 = vst [vmem:[#allocation14] sm:$0xff] %v2524_v52  ;;  %v2525_v17 = vadd.f32 %v2521_v54, %v3848_v37 }
 0x9a5   :  { %2529 = vst [vmem:[#allocation14 + $0x8] sm:$0xff] %v2525_v17 }
 0x9d8   :  { %v2741_v18 = vpop.f32.mrb[48].mxu1 }
 0x9d9   :  { %v2769_v23 = vpop.f32.mrb[52].mxu0  ;;  %v2742_v16 = vpop.f32.mrb[49].mxu1 }
 0x9da   :  { %v2743_v55 = vadd.f32 %v2742_v16, %v2741_v18  ;;  %v2770_v53 = vpop.f32.mrb[53].mxu0  ;;  %v2744_v58 = vpop.f32.mrb[50].mxu1 }
 0x9db   :  { %v2771_v40 = vadd.f32 %v2770_v53, %v2769_v23  ;;  %v2772_v60 = vpop.f32.mrb[54].mxu0  ;;  %v2745_v61 = vpop.f32.mrb[51].mxu1 }
 0x9dc   :  { %v2465_v2 = vadd.f32 %v2743_v55, %v2644_v0  ;;  %v2746_v3 = vadd.f32 %v2745_v61, %v2744_v58  ;;  %v2773_v19 = vpop.f32.mrb[55].mxu0 }
 0x9dd   :  { %v2774_v62 = vadd.f32 %v2773_v19, %v2772_v60 }
 0x9de   :  { %v2514_v32 = vadd.f32 %v2771_v40, %v2465_v2  ;;  %v2468_v4 = vadd.f32 %v2746_v3, %v2644_v0 }
 0x9e0   :  { %v2522_v37 = vmul.f32 %v2514_v32, %v163_v29  ;;  %v2517_v57 = vadd.f32 %v2774_v62, %v2468_v4 }
 0x9e2   :  { %v2526_v51 = vadd.f32 %v2522_v37, %v3858_v39  ;;  %v2523_v8 = vmul.f32 %v2517_v57, %v163_v29 }
 0x9e4   :  { %2530 = vst [vmem:[#allocation14 + $0x10] sm:$0xff] %v2526_v51  ;;  %v2527_v12 = vadd.f32 %v2523_v8, %v3864_v20 }
 0x9e6   :  { %2531 = vst [vmem:[#allocation14 + $0x18] sm:$0xff] %v2527_v12 }
 0x9e7   :  { %3316 = shalt.err (!%p3313_p10)
}
 0x9e8   :  { %s3317_s17 = scalar_lea.hbm %s3981_s12, 512 }
 0x9e9   :  { %p3318_p11 = scmp.ne.s32.totalorder %s3981_s12, %s3317_s17  ;;  %p3321_p12 = scmp.lt.u32.totalorder %s3317_s17, %s3981_s12 }
 0x9eb   :  { %p3323_p13 = pnand %p3321_p12, %p3318_p11 }
 0x9ed   :  { %3326 = shalt.err (!%p3323_p13)
}
 0x9ee   :  { %2543 = dma.vmem_to_hbm [thread:$0]  %s2538_s15, 512, %s3981_s12, [#allocation5], %s3342_s6, %s3342_s6, %s3343_s24  }
 0x9ef   :  { %3335 = dma.done.wait [#allocation5], 512  }
 0x9f0   :  { %3336 = vsyncadd [#allocation5], 4294966784 }
 0x9f1   :  { %2547 = vsyncpa [#allocation4], 1 }
 0x9f2   :  { %2548 = vsyncpa [#allocation7], 1 }
 0x9f3   :  { %2549 = vsyncpa [#allocation10], 1 }
 0x9f4   :  { %2550 = vsyncpa [#allocation13], 1 }
 0x9f5   :  { %2551 = vsyncpa [#allocation5], 1 }

</bundles_post_ra>
